<compile_context>
chip_gen: v5e
topology: v5e:2x2
jax: 0.10.0
libtpu: 0.0.40
codegen_flags: <defaults>
</compile_context>

<pallas_src>
import math
from functools import partial

import jax
import jax.numpy as jnp
from jax.experimental import pallas as pl
from jax.experimental.pallas import tpu as pltpu

LANES = 128


def _padding(downsample, kernel_size):
    """Same formula as the PyTorch module."""
    return max(0, int(math.floor((kernel_size - downsample + 1) / 2)))


def _zero_pad_rows(a, lo, hi):
    """Pad a 2-D value with `lo`/`hi` zero rows (sublane axis)."""
    parts = []
    if lo > 0:
        parts.append(jnp.zeros((lo, a.shape[1]), a.dtype))
    parts.append(a)
    if hi > 0:
        parts.append(jnp.zeros((hi, a.shape[1]), a.dtype))
    return parts[0] if len(parts) == 1 else jnp.concatenate(parts, axis=0)


def _resblock1d_kernel(*refs, k, ds, p1, p2, use_skip_conv, mxu_dtype):
    """One batch tile (Bt elements) per grid step.  All refs are VMEM blocks."""
    if use_skip_conv:
        (x_ref, y_ref, w1_ref, w2_ref, wskip_ref,
         b1_ref, s2_ref, b2_ref, out_x_ref, out_y_ref) = refs
    else:
        (x_ref, y_ref, w1_ref, w2_ref,
         b1_ref, s2_ref, b2_ref, out_x_ref, out_y_ref) = refs
        wskip_ref = None

    f32 = jnp.float32
    Bt, L, Cin = x_ref.shape
    _, Lout, Cp = out_x_ref.shape
    nq = (k - 1) // ds + 1                       # number of conv2 row groups
    Lq = max(-(-(L + 2 * p2) // ds), nq - 1 + Lout)

    b1 = b1_ref[...]                             # (1, Cp) bn1 shift (scale folded in w1)
    s2 = s2_ref[...]                             # (1, Cp) bn2 scale
    b2 = b2_ref[...]                             # (1, Cp) bn2 shift

    for b in range(Bt):                          # amortize grid-step overhead
        # ---- conv1 ("same", stride 1): per-tap accumulation on the MXU ------
        x = x_ref[b]                                        # (L, Cin) mxu_dtype
        xp = _zero_pad_rows(x, p1, p1)                      # (L + 2*p1, Cin)
        h = jnp.dot(xp[0:L, :], w1_ref[0], preferred_element_type=f32)
        for t in range(1, k):
            h += jnp.dot(xp[t:t + L, :], w1_ref[t], preferred_element_type=f32)
        h = jnp.maximum(h + b1, 0.0)                        # bn1 shift + relu (dropout1 = id)

        # ---- conv2 (stride = ds): lane-packed (Lq, ds*Cp) view, tap groups ---
        hm = h.astype(mxu_dtype)
        hp = _zero_pad_rows(hm, p2, Lq * ds - L - p2)       # (Lq*ds, Cp)
        hp2 = hp.reshape(Lq, ds * Cp) if ds > 1 else hp     # last dim stays 128-multiple
        acc = None
        for q in range(nq):
            m = min(ds, k - q * ds)                         # taps in this row group
            a = hp2[q:q + Lout, 0:m * Cp]                   # (Lout, m*Cp) aligned lane slice
            w = w2_ref[q * ds * Cp:(q * ds + m) * Cp, :]    # (m*Cp, Cp)
            d = jnp.dot(a, w, preferred_element_type=f32)   # K = m*Cp >= 128
            acc = d if acc is None else acc + d

        # ---- skip: MaxPool1d(ds) over lane-packed y, then optional 1x1 conv --
        yb = y_ref[b]                                       # (Lout, ds*Cin)
        ys = yb[:, 0:Cin]
        for r in range(1, ds):
            ys = jnp.maximum(ys, yb[:, r * Cin:(r + 1) * Cin])
        if use_skip_conv:
            ys = jnp.dot(ys.astype(mxu_dtype), wskip_ref[...],
                         preferred_element_type=f32)        # (Lout, Cp)
        else:
            ys = ys.astype(f32)
            if Cp > Cin:                                    # lane-pad identity skip
                ys = jnp.concatenate([ys, jnp.zeros((Lout, Cp - Cin), f32)], axis=1)

        # ---- residual add, y_out, bn2 + relu ---------------------------------
        x2 = acc + ys
        out_y_ref[b] = x2.astype(out_y_ref.dtype)           # y = x (pre-bn2)
        out_x_ref[b] = jnp.maximum(x2 * s2 + b2, 0.0).astype(out_x_ref.dtype)


@partial(jax.jit, static_argnames=("kernel_size", "downsample", "eps", "mxu_dtype",
                                   "out_dtype", "batch_tile", "single_buffer_weights",
                                   "vmem_limit_bytes"))
def _forward_impl(x, y, params, *, kernel_size, downsample, eps, mxu_dtype,
                  out_dtype, batch_tile, single_buffer_weights, vmem_limit_bytes):
    N, Cin, L = x.shape
    Cout = params["w1"].shape[0]
    k, ds, Bt = int(kernel_size), int(downsample), int(batch_tile)
    Lout = L // ds
    p1 = _padding(1, k)
    p2 = _padding(ds, k)
    Cp = ((Cout + LANES - 1) // LANES) * LANES
    use_skip_conv = (Cin != Cout)
    f32 = jnp.float32

    # NCL -> NLC; y lane-packed so MaxPool1d(ds) is a max over ds lane slices.
    x_nlc = jnp.transpose(x, (0, 2, 1)).astype(mxu_dtype)              # (N, L, Cin)
    y_blk = jnp.transpose(y, (0, 2, 1)).astype(mxu_dtype).reshape(N, Lout, ds * Cin)

    def bn_affine(g, b, m, v):
        s = g / jnp.sqrt(v + eps)
        return s, b - m * s

    s1, b1 = bn_affine(params["bn1_w"], params["bn1_b"],
                       params["bn1_rm"], params["bn1_rv"])
    s2, b2 = bn_affine(params["bn2_w"], params["bn2_b"],
                       params["bn2_rm"], params["bn2_rv"])

    def pad_cout(a):                                 # zero-pad last dim Cout -> Cp
        return jnp.pad(a, [(0, 0)] * (a.ndim - 1) + [(0, Cp - Cout)])

    # conv1 weight (Cout, Cin, k) -> (k, Cin, Cp), fold bn1 scale.
    w1f = jnp.transpose(params["w1"], (2, 1, 0)) * s1[None, None, :]
    w1f = pad_cout(w1f).astype(mxu_dtype)                              # (k, Cin, Cp)
    # conv2 weight (Cout, Cout, k) -> (k*Cp, Cp), both channel dims padded.
    w2f = pad_cout(jnp.transpose(params["w2"], (2, 1, 0)))             # (k, Cout, Cp)
    w2f = jnp.pad(w2f, ((0, 0), (0, Cp - Cout), (0, 0)))
    w2f = w2f.reshape(k * Cp, Cp).astype(mxu_dtype)

    b1p = pad_cout(b1).reshape(1, Cp).astype(f32)
    s2p = pad_cout(s2).reshape(1, Cp).astype(f32)
    b2p = pad_cout(b2).reshape(1, Cp).astype(f32)

    def const_spec(shape):
        idx = lambda n: (0,) * len(shape)
        if single_buffer_weights:
            # Constant-index weight blocks: no need to double-buffer them.
            return pl.BlockSpec(shape, idx, pipeline_mode=pl.Buffered(1))
        return pl.BlockSpec(shape, idx)

    inputs = [x_nlc, y_blk, w1f, w2f]
    in_specs = [
        pl.BlockSpec((Bt, L, Cin), lambda n: (n, 0, 0)),
        pl.BlockSpec((Bt, Lout, ds * Cin), lambda n: (n, 0, 0)),
        const_spec((k, Cin, Cp)),
        const_spec((k * Cp, Cp)),
    ]
    if use_skip_conv:
        wskip = jnp.transpose(params["wskip"][:, :, 0], (1, 0))        # (Cin, Cout)
        inputs.append(pad_cout(wskip).astype(mxu_dtype))               # (Cin, Cp)
        in_specs.append(const_spec((Cin, Cp)))
    inputs += [b1p, s2p, b2p]
    in_specs += [const_spec((1, Cp)) for _ in range(3)]

    kernel = partial(_resblock1d_kernel, k=k, ds=ds, p1=p1, p2=p2,
                     use_skip_conv=use_skip_conv, mxu_dtype=mxu_dtype)

    out_x_p, out_y_p = pl.pallas_call(
        kernel,
        grid=(N // Bt,),
        in_specs=in_specs,
        out_specs=(pl.BlockSpec((Bt, Lout, Cp), lambda n: (n, 0, 0)),
                   pl.BlockSpec((Bt, Lout, Cp), lambda n: (n, 0, 0))),
        out_shape=(jax.ShapeDtypeStruct((N, Lout, Cp), out_dtype),
                   jax.ShapeDtypeStruct((N, Lout, Cp), out_dtype)),
        compiler_params=pltpu.CompilerParams(
            dimension_semantics=("parallel",),
            vmem_limit_bytes=vmem_limit_bytes),
    )(*inputs)

    # Drop lane padding and return PyTorch-style NCL.
    out_x = jnp.transpose(out_x_p[:, :, :Cout], (0, 2, 1))
    out_y = jnp.transpose(out_y_p[:, :, :Cout], (0, 2, 1))
    return out_x, out_y


def _pick_vmem_limit():
    """Generation-aware scoped-VMEM limit (~75% of physical, 32..100 MiB)."""
    try:
        info = pltpu.get_tpu_info()
        cap = int(getattr(info, "vmem_capacity_bytes", 64 * 1024 * 1024))
    except Exception:
        cap = 64 * 1024 * 1024
    return int(min(max(cap * 3 // 4, 32 * 1024 * 1024), 100 * 1024 * 1024))


def _pick_batch_tile(N, L, Lout, ds, Cin, Cp, act_bytes, out_bytes,
                     budget=8 * 1024 * 1024):
    """Largest divisor of N whose per-step (double-buffered) blocks fit `budget`."""
    per = 2 * ((L * Cin + Lout * ds * Cin) * act_bytes + 2 * Lout * Cp * out_bytes)
    max_bt = max(1, budget // max(per, 1))
    bt = 1
    for d in range(1, N + 1):
        if N % d == 0 and d <= max_bt:
            bt = d
    return bt


def resblock1d_forward(x, y, params, *, kernel_size, downsample, eps=1e-5,
                       mxu_dtype=jnp.bfloat16, out_dtype=jnp.float32,
                       batch_tile=None):
    """x, y: (N, C_in, L) float32 (PyTorch NCL).  Returns (x_out, y_out) NCL.

    mxu_dtype=bfloat16 (default) ships activations/weights as bf16 and runs the
    MXU in bf16 with f32 accumulation; BN/ReLU/maxpool math stays f32.
    out_dtype=bfloat16 additionally halves the output writeback DMA.
    """
    N, Cin, L = x.shape
    Cout = params["w1"].shape[0]
    k, ds = int(kernel_size), int(downsample)
    if k % 2 == 0:
        raise ValueError("only odd kernel_size is supported (same as the module)")
    if L % ds != 0:
        raise ValueError("L must be divisible by downsample (residual shapes must match)")
    Lout = L // ds
    p2 = _padding(ds, k)
    if (L + 2 * p2 - k) // ds + 1 != Lout:
        raise ValueError("conv2 output length != L // downsample; residual add would fail")
    Cp = ((Cout + LANES - 1) // LANES) * LANES
    if batch_tile is None:
        batch_tile = _pick_batch_tile(N, L, Lout, ds, Cin, Cp,
                                      jnp.dtype(mxu_dtype).itemsize,
                                      jnp.dtype(out_dtype).itemsize)
    kwargs = dict(kernel_size=k, downsample=ds, eps=float(eps), mxu_dtype=mxu_dtype,
                  out_dtype=out_dtype, batch_tile=int(batch_tile),
                  vmem_limit_bytes=_pick_vmem_limit())
    try:
        return _forward_impl(x, y, params, single_buffer_weights=True, **kwargs)
    except Exception:
        # Fallback for JAX versions where BlockSpec(pipeline_mode=pl.Buffered(1))
        # is unsupported: default double-buffered weight blocks.
        return _forward_impl(x, y, params, single_buffer_weights=False, **kwargs)


def _reference(x, y, params, *, kernel_size, downsample, eps=1e-5):
    """Pure-JAX eval-mode reference (NCL)."""
    N, Cin, L = x.shape
    Cout = params["w1"].shape[0]
    k, ds = kernel_size, downsample
    p1, p2 = _padding(1, k), _padding(ds, k)
    hi = jax.lax.Precision.HIGHEST
    conv = partial(jax.lax.conv_general_dilated,
                   dimension_numbers=("NCH", "OIH", "NCH"), precision=hi)

    def bn(z, g, b, m, v):
        s = (g / jnp.sqrt(v + eps)).reshape(1, -1, 1)
        return z * s + (b.reshape(1, -1, 1) - m.reshape(1, -1, 1) * s)

    ys = y
    if ds > 1:
        ys = ys.reshape(N, Cin, L // ds, ds).max(axis=-1)
    if Cin != Cout:
        ys = conv(ys, params["wskip"], window_strides=(1,), padding=[(0, 0)])
    h = conv(x, params["w1"], window_strides=(1,), padding=[(p1, p1)])
    h = jax.nn.relu(bn(h, params["bn1_w"], params["bn1_b"],
                       params["bn1_rm"], params["bn1_rv"]))
    h = conv(h, params["w2"], window_strides=(ds,), padding=[(p2, p2)])
    x2 = h + ys
    out_x = jax.nn.relu(bn(x2, params["bn2_w"], params["bn2_b"],
                           params["bn2_rm"], params["bn2_rv"]))
    return out_x, x2


if __name__ == "__main__":
    def make_inputs(key, N, Cin, Cout, L, k):
        ks = jax.random.split(key, 13)
        params = {
            "w1": jax.random.normal(ks[0], (Cout, Cin, k), jnp.float32) / math.sqrt(Cin * k),
            "w2": jax.random.normal(ks[1], (Cout, Cout, k), jnp.float32) / math.sqrt(Cout * k),
            "bn1_w": 1.0 + 0.1 * jax.random.normal(ks[3], (Cout,), jnp.float32),
            "bn1_b": 0.1 * jax.random.normal(ks[4], (Cout,), jnp.float32),
            "bn1_rm": 0.1 * jax.random.normal(ks[5], (Cout,), jnp.float32),
            "bn1_rv": 1.0 + 0.1 * jax.random.uniform(ks[6], (Cout,), jnp.float32),
            "bn2_w": 1.0 + 0.1 * jax.random.normal(ks[7], (Cout,), jnp.float32),
            "bn2_b": 0.1 * jax.random.normal(ks[8], (Cout,), jnp.float32),
            "bn2_rm": 0.1 * jax.random.normal(ks[9], (Cout,), jnp.float32),
            "bn2_rv": 1.0 + 0.1 * jax.random.uniform(ks[10], (Cout,), jnp.float32),
        }
        if Cin != Cout:
            params["wskip"] = (jax.random.normal(ks[2], (Cout, Cin, 1), jnp.float32)
                               / math.sqrt(Cin))
        x = jax.random.normal(ks[11], (N, Cin, L), jnp.float32)
        y = jax.random.normal(ks[12], (N, Cin, L), jnp.float32)
        return x, y, params

    key = jax.random.PRNGKey(0)
    kA, kB = jax.random.split(key)

    # Config A: channel expansion + downsample (maxpool + 1x1 skip conv).
    N, Cin, Cout, L, k, ds = 2, 4, 8, 16, 3, 2
    x, y, params = make_inputs(kA, N, Cin, Cout, L, k)
    ref_x, ref_y = _reference(x, y, params, kernel_size=k, downsample=ds)

    # Default fast path: bf16 MXU operands / activations, f32 accumulate + store.
    out_x, out_y = resblock1d_forward(x, y, params, kernel_size=k, downsample=ds)
    jax.block_until_ready((out_x, out_y))
    assert out_x.shape == (N, Cout, L // ds) and out_y.shape == (N, Cout, L // ds)
    assert jnp.allclose(out_x, ref_x, rtol=5e-2, atol=5e-2)
    assert jnp.allclose(out_y, ref_y, rtol=5e-2, atol=5e-2)

    # f32 MXU path (tight tolerance).
    fx, fy = resblock1d_forward(x, y, params, kernel_size=k, downsample=ds,
                                mxu_dtype=jnp.float32)
    jax.block_until_ready((fx, fy))
    assert jnp.allclose(fx, ref_x, rtol=1e-2, atol=1e-2)
    assert jnp.allclose(fy, ref_y, rtol=1e-2, atol=1e-2)

    # bf16 HBM stores for both outputs (halves the padded writeback).
    bx, by = resblock1d_forward(x, y, params, kernel_size=k, downsample=ds,
                                out_dtype=jnp.bfloat16)
    jax.block_until_ready((bx, by))
    assert jnp.allclose(bx.astype(jnp.float32), ref_x, rtol=5e-2, atol=5e-2)
    assert jnp.allclose(by.astype(jnp.float32), ref_y, rtol=5e-2, atol=5e-2)

    # Config B: identity skip path (Cin == Cout, downsample == 1), larger kernel.
    N, Cin, Cout, L, k, ds = 2, 8, 8, 16, 5, 1
    x, y, params = make_inputs(kB, N, Cin, Cout, L, k)
    ref_x, ref_y = _reference(x, y, params, kernel_size=k, downsample=ds)
    out_x, out_y = resblock1d_forward(x, y, params, kernel_size=k, downsample=ds)
    jax.block_until_ready((out_x, out_y))
    assert out_x.shape == (N, Cout, L) and out_y.shape == (N, Cout, L)
    assert jnp.allclose(out_x, ref_x, rtol=5e-2, atol=5e-2)
    assert jnp.allclose(out_y, ref_y, rtol=5e-2, atol=5e-2)

    print("KERNEL_OK")
</pallas_src>

<mosaic_0001>
module attributes {stable_mosaic.version = 11 : i64} {
  func.func @_resblock1d_kernel(%arg0: i32, %arg1: memref<2x16x4xbf16, #tpu.memory_space<vmem>>, %arg2: memref<2x8x8xbf16, #tpu.memory_space<vmem>>, %arg3: memref<3x4x128xbf16, #tpu.memory_space<vmem>>, %arg4: memref<384x128xbf16, #tpu.memory_space<vmem>>, %arg5: memref<4x128xbf16, #tpu.memory_space<vmem>>, %arg6: memref<1x128xf32, #tpu.memory_space<vmem>>, %arg7: memref<1x128xf32, #tpu.memory_space<vmem>>, %arg8: memref<1x128xf32, #tpu.memory_space<vmem>>, %arg9: memref<2x8x128xf32, #tpu.memory_space<vmem>>, %arg10: memref<2x8x128xf32, #tpu.memory_space<vmem>>) attributes {dimension_semantics = [#tpu.dimension_semantics<parallel>], iteration_bounds = array<i64: 1>, scalar_prefetch = 0 : i64, scratch_operands = 0 : i64, tpu.core_type = #tpu.core_type<tc>, window_params = [{transform_indices = @transform_0, window_bounds = array<i64: 2, 16, 4>}, {transform_indices = @transform_1, window_bounds = array<i64: 2, 8, 8>}, {pipeline_mode = #tpu.pipeline_mode<synchronous>, transform_indices = @transform_2, window_bounds = array<i64: 3, 4, 128>}, {pipeline_mode = #tpu.pipeline_mode<synchronous>, transform_indices = @transform_3, window_bounds = array<i64: 384, 128>}, {pipeline_mode = #tpu.pipeline_mode<synchronous>, transform_indices = @transform_4, window_bounds = array<i64: 4, 128>}, {pipeline_mode = #tpu.pipeline_mode<synchronous>, transform_indices = @transform_5, window_bounds = array<i64: 1, 128>}, {pipeline_mode = #tpu.pipeline_mode<synchronous>, transform_indices = @transform_6, window_bounds = array<i64: 1, 128>}, {pipeline_mode = #tpu.pipeline_mode<synchronous>, transform_indices = @transform_7, window_bounds = array<i64: 1, 128>}, {transform_indices = @transform_8, window_bounds = array<i64: 2, 8, 128>}, {transform_indices = @transform_9, window_bounds = array<i64: 2, 8, 128>}]} {
    %c0 = arith.constant 0 : index
    %c0_0 = arith.constant 0 : index
    %0 = vector.load %arg6[%c0, %c0_0] : memref<1x128xf32, #tpu.memory_space<vmem>>, vector<1x128xf32>
    %c0_1 = arith.constant 0 : index
    %c0_2 = arith.constant 0 : index
    %1 = vector.load %arg7[%c0_1, %c0_2] : memref<1x128xf32, #tpu.memory_space<vmem>>, vector<1x128xf32>
    %c0_3 = arith.constant 0 : index
    %c0_4 = arith.constant 0 : index
    %2 = vector.load %arg8[%c0_3, %c0_4] : memref<1x128xf32, #tpu.memory_space<vmem>>, vector<1x128xf32>
    %c0_5 = arith.constant 0 : index
    %c0_6 = arith.constant 0 : index
    %c0_7 = arith.constant 0 : index
    %3 = vector.load %arg1[%c0_5, %c0_6, %c0_7] : memref<2x16x4xbf16, #tpu.memory_space<vmem>>, vector<1x16x4xbf16>
    %4 = vector.shape_cast %3 : vector<1x16x4xbf16> to vector<16x4xbf16>
    %cst = arith.constant 0.000000e+00 : bf16
    %5 = vector.broadcast %cst : bf16 to vector<1x4xbf16>
    %cst_8 = arith.constant 0.000000e+00 : bf16
    %6 = vector.broadcast %cst_8 : bf16 to vector<1x4xbf16>
    %7 = tpu.concatenate %5, %4, %6 in 0 : vector<1x4xbf16>, vector<16x4xbf16>, vector<1x4xbf16> -> vector<18x4xbf16>
    %8 = vector.extract_strided_slice %7 {offsets = [0, 0], sizes = [16, 4], strides = [1, 1]} : vector<18x4xbf16> to vector<16x4xbf16>
    %c0_9 = arith.constant 0 : index
    %c0_10 = arith.constant 0 : index
    %c0_11 = arith.constant 0 : index
    %9 = vector.load %arg3[%c0_9, %c0_10, %c0_11] : memref<3x4x128xbf16, #tpu.memory_space<vmem>>, vector<1x4x128xbf16>
    %10 = vector.shape_cast %9 : vector<1x4x128xbf16> to vector<4x128xbf16>
    %cst_12 = arith.constant dense<0.000000e+00> : vector<16x128xf32>
    %11 = tpu.matmul %8, %10, %cst_12 {dimension_numbers = #tpu.dot_dimension_numbers<[1], [0], [0], [1], [0, 0, 1, 1], [], []>} : vector<16x4xbf16>, vector<4x128xbf16>, vector<16x128xf32> -> vector<16x128xf32>
    %12 = vector.extract_strided_slice %7 {offsets = [1, 0], sizes = [16, 4], strides = [1, 1]} : vector<18x4xbf16> to vector<16x4xbf16>
    %c1 = arith.constant 1 : index
    %c0_13 = arith.constant 0 : index
    %c0_14 = arith.constant 0 : index
    %13 = vector.load %arg3[%c1, %c0_13, %c0_14] : memref<3x4x128xbf16, #tpu.memory_space<vmem>>, vector<1x4x128xbf16>
    %14 = vector.shape_cast %13 : vector<1x4x128xbf16> to vector<4x128xbf16>
    %cst_15 = arith.constant dense<0.000000e+00> : vector<16x128xf32>
    %15 = tpu.matmul %12, %14, %cst_15 {dimension_numbers = #tpu.dot_dimension_numbers<[1], [0], [0], [1], [0, 0, 1, 1], [], []>} : vector<16x4xbf16>, vector<4x128xbf16>, vector<16x128xf32> -> vector<16x128xf32>
    %16 = arith.addf %11, %15 : vector<16x128xf32>
    %17 = vector.extract_strided_slice %7 {offsets = [2, 0], sizes = [16, 4], strides = [1, 1]} : vector<18x4xbf16> to vector<16x4xbf16>
    %c2 = arith.constant 2 : index
    %c0_16 = arith.constant 0 : index
    %c0_17 = arith.constant 0 : index
    %18 = vector.load %arg3[%c2, %c0_16, %c0_17] : memref<3x4x128xbf16, #tpu.memory_space<vmem>>, vector<1x4x128xbf16>
    %19 = vector.shape_cast %18 : vector<1x4x128xbf16> to vector<4x128xbf16>
    %cst_18 = arith.constant dense<0.000000e+00> : vector<16x128xf32>
    %20 = tpu.matmul %17, %19, %cst_18 {dimension_numbers = #tpu.dot_dimension_numbers<[1], [0], [0], [1], [0, 0, 1, 1], [], []>} : vector<16x4xbf16>, vector<4x128xbf16>, vector<16x128xf32> -> vector<16x128xf32>
    %21 = arith.addf %16, %20 : vector<16x128xf32>
    %22 = vector.broadcast %0 : vector<1x128xf32> to vector<16x128xf32>
    %23 = arith.addf %21, %22 : vector<16x128xf32>
    %cst_19 = arith.constant 0.000000e+00 : f32
    %24 = vector.broadcast %cst_19 : f32 to vector<16x128xf32>
    %25 = arith.maximumf %23, %24 : vector<16x128xf32>
    %26 = arith.truncf %25 : vector<16x128xf32> to vector<16x128xbf16>
    %cst_20 = arith.constant 0.000000e+00 : bf16
    %27 = vector.broadcast %cst_20 : bf16 to vector<1x128xbf16>
    %cst_21 = arith.constant 0.000000e+00 : bf16
    %28 = vector.broadcast %cst_21 : bf16 to vector<1x128xbf16>
    %29 = tpu.concatenate %27, %26, %28 in 0 : vector<1x128xbf16>, vector<16x128xbf16>, vector<1x128xbf16> -> vector<18x128xbf16>
    %30 = vector.shape_cast %29 : vector<18x128xbf16> to vector<9x256xbf16>
    %31 = vector.extract_strided_slice %30 {offsets = [0, 0], sizes = [8, 256], strides = [1, 1]} : vector<9x256xbf16> to vector<8x256xbf16>
    %c0_22 = arith.constant 0 : index
    %c0_23 = arith.constant 0 : index
    %32 = vector.load %arg4[%c0_22, %c0_23] : memref<384x128xbf16, #tpu.memory_space<vmem>>, vector<256x128xbf16>
    %cst_24 = arith.constant dense<0.000000e+00> : vector<8x128xf32>
    %33 = tpu.matmul %31, %32, %cst_24 {dimension_numbers = #tpu.dot_dimension_numbers<[1], [0], [0], [1], [0, 0, 1, 1], [], []>} : vector<8x256xbf16>, vector<256x128xbf16>, vector<8x128xf32> -> vector<8x128xf32>
    %34 = vector.extract_strided_slice %30 {offsets = [1, 0], sizes = [8, 128], strides = [1, 1]} : vector<9x256xbf16> to vector<8x128xbf16>
    %c256 = arith.constant 256 : index
    %c0_25 = arith.constant 0 : index
    %35 = vector.load %arg4[%c256, %c0_25] : memref<384x128xbf16, #tpu.memory_space<vmem>>, vector<128x128xbf16>
    %cst_26 = arith.constant dense<0.000000e+00> : vector<8x128xf32>
    %36 = tpu.matmul %34, %35, %cst_26 {dimension_numbers = #tpu.dot_dimension_numbers<[1], [0], [0], [1], [0, 0, 1, 1], [], []>} : vector<8x128xbf16>, vector<128x128xbf16>, vector<8x128xf32> -> vector<8x128xf32>
    %37 = arith.addf %33, %36 : vector<8x128xf32>
    %c0_27 = arith.constant 0 : index
    %c0_28 = arith.constant 0 : index
    %c0_29 = arith.constant 0 : index
    %38 = vector.load %arg2[%c0_27, %c0_28, %c0_29] : memref<2x8x8xbf16, #tpu.memory_space<vmem>>, vector<1x8x8xbf16>
    %39 = vector.shape_cast %38 : vector<1x8x8xbf16> to vector<8x8xbf16>
    %40 = vector.extract_strided_slice %39 {offsets = [0, 0], sizes = [8, 4], strides = [1, 1]} : vector<8x8xbf16> to vector<8x4xbf16>
    %41 = vector.extract_strided_slice %39 {offsets = [0, 4], sizes = [8, 4], strides = [1, 1]} : vector<8x8xbf16> to vector<8x4xbf16>
    %42 = arith.maximumf %40, %41 : vector<8x4xbf16>
    %c0_30 = arith.constant 0 : index
    %c0_31 = arith.constant 0 : index
    %43 = vector.load %arg5[%c0_30, %c0_31] : memref<4x128xbf16, #tpu.memory_space<vmem>>, vector<4x128xbf16>
    %cst_32 = arith.constant dense<0.000000e+00> : vector<8x128xf32>
    %44 = tpu.matmul %42, %43, %cst_32 {dimension_numbers = #tpu.dot_dimension_numbers<[1], [0], [0], [1], [0, 0, 1, 1], [], []>} : vector<8x4xbf16>, vector<4x128xbf16>, vector<8x128xf32> -> vector<8x128xf32>
    %45 = arith.addf %37, %44 : vector<8x128xf32>
    %c0_33 = arith.constant 0 : index
    %c0_34 = arith.constant 0 : index
    %c0_35 = arith.constant 0 : index
    %46 = vector.load %arg10[%c0_33, %c0_34, %c0_35] : memref<2x8x128xf32, #tpu.memory_space<vmem>>, vector<1x8x128xf32>
    %47 = vector.shape_cast %46 : vector<1x8x128xf32> to vector<8x128xf32>
    %48 = vector.shape_cast %45 : vector<8x128xf32> to vector<1x8x128xf32>
    tpu.vector_store %arg10[%c0_33, %c0_34, %c0_35], %48 {strides = array<i32>} : memref<2x8x128xf32, #tpu.memory_space<vmem>>, vector<1x8x128xf32>,
    %49 = vector.broadcast %1 : vector<1x128xf32> to vector<8x128xf32>
    %50 = arith.mulf %45, %49 : vector<8x128xf32>
    %51 = vector.broadcast %2 : vector<1x128xf32> to vector<8x128xf32>
    %52 = arith.addf %50, %51 : vector<8x128xf32>
    %cst_36 = arith.constant 0.000000e+00 : f32
    %53 = vector.broadcast %cst_36 : f32 to vector<8x128xf32>
    %54 = arith.maximumf %52, %53 : vector<8x128xf32>
    %c0_37 = arith.constant 0 : index
    %c0_38 = arith.constant 0 : index
    %c0_39 = arith.constant 0 : index
    %55 = vector.load %arg9[%c0_37, %c0_38, %c0_39] : memref<2x8x128xf32, #tpu.memory_space<vmem>>, vector<1x8x128xf32>
    %56 = vector.shape_cast %55 : vector<1x8x128xf32> to vector<8x128xf32>
    %57 = vector.shape_cast %54 : vector<8x128xf32> to vector<1x8x128xf32>
    tpu.vector_store %arg9[%c0_37, %c0_38, %c0_39], %57 {strides = array<i32>} : memref<2x8x128xf32, #tpu.memory_space<vmem>>, vector<1x8x128xf32>,
    %c1_40 = arith.constant 1 : index
    %c0_41 = arith.constant 0 : index
    %c0_42 = arith.constant 0 : index
    %58 = vector.load %arg1[%c1_40, %c0_41, %c0_42] : memref<2x16x4xbf16, #tpu.memory_space<vmem>>, vector<1x16x4xbf16>
    %59 = vector.shape_cast %58 : vector<1x16x4xbf16> to vector<16x4xbf16>
    %cst_43 = arith.constant 0.000000e+00 : bf16
    %60 = vector.broadcast %cst_43 : bf16 to vector<1x4xbf16>
    %cst_44 = arith.constant 0.000000e+00 : bf16
    %61 = vector.broadcast %cst_44 : bf16 to vector<1x4xbf16>
    %62 = tpu.concatenate %60, %59, %61 in 0 : vector<1x4xbf16>, vector<16x4xbf16>, vector<1x4xbf16> -> vector<18x4xbf16>
    %63 = vector.extract_strided_slice %62 {offsets = [0, 0], sizes = [16, 4], strides = [1, 1]} : vector<18x4xbf16> to vector<16x4xbf16>
    %c0_45 = arith.constant 0 : index
    %c0_46 = arith.constant 0 : index
    %c0_47 = arith.constant 0 : index
    %64 = vector.load %arg3[%c0_45, %c0_46, %c0_47] : memref<3x4x128xbf16, #tpu.memory_space<vmem>>, vector<1x4x128xbf16>
    %65 = vector.shape_cast %64 : vector<1x4x128xbf16> to vector<4x128xbf16>
    %cst_48 = arith.constant dense<0.000000e+00> : vector<16x128xf32>
    %66 = tpu.matmul %63, %65, %cst_48 {dimension_numbers = #tpu.dot_dimension_numbers<[1], [0], [0], [1], [0, 0, 1, 1], [], []>} : vector<16x4xbf16>, vector<4x128xbf16>, vector<16x128xf32> -> vector<16x128xf32>
    %67 = vector.extract_strided_slice %62 {offsets = [1, 0], sizes = [16, 4], strides = [1, 1]} : vector<18x4xbf16> to vector<16x4xbf16>
    %c1_49 = arith.constant 1 : index
    %c0_50 = arith.constant 0 : index
    %c0_51 = arith.constant 0 : index
    %68 = vector.load %arg3[%c1_49, %c0_50, %c0_51] : memref<3x4x128xbf16, #tpu.memory_space<vmem>>, vector<1x4x128xbf16>
    %69 = vector.shape_cast %68 : vector<1x4x128xbf16> to vector<4x128xbf16>
    %cst_52 = arith.constant dense<0.000000e+00> : vector<16x128xf32>
    %70 = tpu.matmul %67, %69, %cst_52 {dimension_numbers = #tpu.dot_dimension_numbers<[1], [0], [0], [1], [0, 0, 1, 1], [], []>} : vector<16x4xbf16>, vector<4x128xbf16>, vector<16x128xf32> -> vector<16x128xf32>
    %71 = arith.addf %66, %70 : vector<16x128xf32>
    %72 = vector.extract_strided_slice %62 {offsets = [2, 0], sizes = [16, 4], strides = [1, 1]} : vector<18x4xbf16> to vector<16x4xbf16>
    %c2_53 = arith.constant 2 : index
    %c0_54 = arith.constant 0 : index
    %c0_55 = arith.constant 0 : index
    %73 = vector.load %arg3[%c2_53, %c0_54, %c0_55] : memref<3x4x128xbf16, #tpu.memory_space<vmem>>, vector<1x4x128xbf16>
    %74 = vector.shape_cast %73 : vector<1x4x128xbf16> to vector<4x128xbf16>
    %cst_56 = arith.constant dense<0.000000e+00> : vector<16x128xf32>
    %75 = tpu.matmul %72, %74, %cst_56 {dimension_numbers = #tpu.dot_dimension_numbers<[1], [0], [0], [1], [0, 0, 1, 1], [], []>} : vector<16x4xbf16>, vector<4x128xbf16>, vector<16x128xf32> -> vector<16x128xf32>
    %76 = arith.addf %71, %75 : vector<16x128xf32>
    %77 = vector.broadcast %0 : vector<1x128xf32> to vector<16x128xf32>
    %78 = arith.addf %76, %77 : vector<16x128xf32>
    %cst_57 = arith.constant 0.000000e+00 : f32
    %79 = vector.broadcast %cst_57 : f32 to vector<16x128xf32>
    %80 = arith.maximumf %78, %79 : vector<16x128xf32>
    %81 = arith.truncf %80 : vector<16x128xf32> to vector<16x128xbf16>
    %cst_58 = arith.constant 0.000000e+00 : bf16
    %82 = vector.broadcast %cst_58 : bf16 to vector<1x128xbf16>
    %cst_59 = arith.constant 0.000000e+00 : bf16
    %83 = vector.broadcast %cst_59 : bf16 to vector<1x128xbf16>
    %84 = tpu.concatenate %82, %81, %83 in 0 : vector<1x128xbf16>, vector<16x128xbf16>, vector<1x128xbf16> -> vector<18x128xbf16>
    %85 = vector.shape_cast %84 : vector<18x128xbf16> to vector<9x256xbf16>
    %86 = vector.extract_strided_slice %85 {offsets = [0, 0], sizes = [8, 256], strides = [1, 1]} : vector<9x256xbf16> to vector<8x256xbf16>
    %c0_60 = arith.constant 0 : index
    %c0_61 = arith.constant 0 : index
    %87 = vector.load %arg4[%c0_60, %c0_61] : memref<384x128xbf16, #tpu.memory_space<vmem>>, vector<256x128xbf16>
    %cst_62 = arith.constant dense<0.000000e+00> : vector<8x128xf32>
    %88 = tpu.matmul %86, %87, %cst_62 {dimension_numbers = #tpu.dot_dimension_numbers<[1], [0], [0], [1], [0, 0, 1, 1], [], []>} : vector<8x256xbf16>, vector<256x128xbf16>, vector<8x128xf32> -> vector<8x128xf32>
    %89 = vector.extract_strided_slice %85 {offsets = [1, 0], sizes = [8, 128], strides = [1, 1]} : vector<9x256xbf16> to vector<8x128xbf16>
    %c256_63 = arith.constant 256 : index
    %c0_64 = arith.constant 0 : index
    %90 = vector.load %arg4[%c256_63, %c0_64] : memref<384x128xbf16, #tpu.memory_space<vmem>>, vector<128x128xbf16>
    %cst_65 = arith.constant dense<0.000000e+00> : vector<8x128xf32>
    %91 = tpu.matmul %89, %90, %cst_65 {dimension_numbers = #tpu.dot_dimension_numbers<[1], [0], [0], [1], [0, 0, 1, 1], [], []>} : vector<8x128xbf16>, vector<128x128xbf16>, vector<8x128xf32> -> vector<8x128xf32>
    %92 = arith.addf %88, %91 : vector<8x128xf32>
    %c1_66 = arith.constant 1 : index
    %c0_67 = arith.constant 0 : index
    %c0_68 = arith.constant 0 : index
    %93 = vector.load %arg2[%c1_66, %c0_67, %c0_68] : memref<2x8x8xbf16, #tpu.memory_space<vmem>>, vector<1x8x8xbf16>
    %94 = vector.shape_cast %93 : vector<1x8x8xbf16> to vector<8x8xbf16>
    %95 = vector.extract_strided_slice %94 {offsets = [0, 0], sizes = [8, 4], strides = [1, 1]} : vector<8x8xbf16> to vector<8x4xbf16>
    %96 = vector.extract_strided_slice %94 {offsets = [0, 4], sizes = [8, 4], strides = [1, 1]} : vector<8x8xbf16> to vector<8x4xbf16>
    %97 = arith.maximumf %95, %96 : vector<8x4xbf16>
    %c0_69 = arith.constant 0 : index
    %c0_70 = arith.constant 0 : index
    %98 = vector.load %arg5[%c0_69, %c0_70] : memref<4x128xbf16, #tpu.memory_space<vmem>>, vector<4x128xbf16>
    %cst_71 = arith.constant dense<0.000000e+00> : vector<8x128xf32>
    %99 = tpu.matmul %97, %98, %cst_71 {dimension_numbers = #tpu.dot_dimension_numbers<[1], [0], [0], [1], [0, 0, 1, 1], [], []>} : vector<8x4xbf16>, vector<4x128xbf16>, vector<8x128xf32> -> vector<8x128xf32>
    %100 = arith.addf %92, %99 : vector<8x128xf32>
    %c1_72 = arith.constant 1 : index
    %c0_73 = arith.constant 0 : index
    %c0_74 = arith.constant 0 : index
    %101 = vector.load %arg10[%c1_72, %c0_73, %c0_74] : memref<2x8x128xf32, #tpu.memory_space<vmem>>, vector<1x8x128xf32>
    %102 = vector.shape_cast %101 : vector<1x8x128xf32> to vector<8x128xf32>
    %103 = vector.shape_cast %100 : vector<8x128xf32> to vector<1x8x128xf32>
    tpu.vector_store %arg10[%c1_72, %c0_73, %c0_74], %103 {strides = array<i32>} : memref<2x8x128xf32, #tpu.memory_space<vmem>>, vector<1x8x128xf32>,
    %104 = vector.broadcast %1 : vector<1x128xf32> to vector<8x128xf32>
    %105 = arith.mulf %100, %104 : vector<8x128xf32>
    %106 = vector.broadcast %2 : vector<1x128xf32> to vector<8x128xf32>
    %107 = arith.addf %105, %106 : vector<8x128xf32>
    %cst_75 = arith.constant 0.000000e+00 : f32
    %108 = vector.broadcast %cst_75 : f32 to vector<8x128xf32>
    %109 = arith.maximumf %107, %108 : vector<8x128xf32>
    %c1_76 = arith.constant 1 : index
    %c0_77 = arith.constant 0 : index
    %c0_78 = arith.constant 0 : index
    %110 = vector.load %arg9[%c1_76, %c0_77, %c0_78] : memref<2x8x128xf32, #tpu.memory_space<vmem>>, vector<1x8x128xf32>
    %111 = vector.shape_cast %110 : vector<1x8x128xf32> to vector<8x128xf32>
    %112 = vector.shape_cast %109 : vector<8x128xf32> to vector<1x8x128xf32>
    tpu.vector_store %arg9[%c1_76, %c0_77, %c0_78], %112 {strides = array<i32>} : memref<2x8x128xf32, #tpu.memory_space<vmem>>, vector<1x8x128xf32>,
    return
  }
  func.func @transform_0(%arg0: i32) -> (i32, i32, i32) {
    %c0_i32 = arith.constant 0 : i32
    %c0_i32_0 = arith.constant 0 : i32
    %c0_i32_1 = arith.constant 0 : i32
    return %arg0, %c0_i32, %c0_i32_0 : i32, i32, i32
  }
  func.func @transform_1(%arg0: i32) -> (i32, i32, i32) {
    %c0_i32 = arith.constant 0 : i32
    %c0_i32_0 = arith.constant 0 : i32
    %c0_i32_1 = arith.constant 0 : i32
    return %arg0, %c0_i32, %c0_i32_0 : i32, i32, i32
  }
  func.func @transform_2(%arg0: i32) -> (i32, i32, i32) {
    %c0_i32 = arith.constant 0 : i32
    %c0_i32_0 = arith.constant 0 : i32
    %c0_i32_1 = arith.constant 0 : i32
    %c0_i32_2 = arith.constant 0 : i32
    return %c0_i32, %c0_i32_0, %c0_i32_1 : i32, i32, i32
  }
  func.func @transform_3(%arg0: i32) -> (i32, i32) {
    %c0_i32 = arith.constant 0 : i32
    %c0_i32_0 = arith.constant 0 : i32
    %c0_i32_1 = arith.constant 0 : i32
    return %c0_i32, %c0_i32_0 : i32, i32
  }
  func.func @transform_4(%arg0: i32) -> (i32, i32) {
    %c0_i32 = arith.constant 0 : i32
    %c0_i32_0 = arith.constant 0 : i32
    %c0_i32_1 = arith.constant 0 : i32
    return %c0_i32, %c0_i32_0 : i32, i32
  }
  func.func @transform_5(%arg0: i32) -> (i32, i32) {
    %c0_i32 = arith.constant 0 : i32
    %c0_i32_0 = arith.constant 0 : i32
    %c0_i32_1 = arith.constant 0 : i32
    return %c0_i32, %c0_i32_0 : i32, i32
  }
  func.func @transform_6(%arg0: i32) -> (i32, i32) {
    %c0_i32 = arith.constant 0 : i32
    %c0_i32_0 = arith.constant 0 : i32
    %c0_i32_1 = arith.constant 0 : i32
    return %c0_i32, %c0_i32_0 : i32, i32
  }
  func.func @transform_7(%arg0: i32) -> (i32, i32) {
    %c0_i32 = arith.constant 0 : i32
    %c0_i32_0 = arith.constant 0 : i32
    %c0_i32_1 = arith.constant 0 : i32
    return %c0_i32, %c0_i32_0 : i32, i32
  }
  func.func @transform_8(%arg0: i32) -> (i32, i32, i32) {
    %c0_i32 = arith.constant 0 : i32
    %c0_i32_0 = arith.constant 0 : i32
    %c0_i32_1 = arith.constant 0 : i32
    return %arg0, %c0_i32, %c0_i32_0 : i32, i32, i32
  }
  func.func @transform_9(%arg0: i32) -> (i32, i32, i32) {
    %c0_i32 = arith.constant 0 : i32
    %c0_i32_0 = arith.constant 0 : i32
    %c0_i32_1 = arith.constant 0 : i32
    return %arg0, %c0_i32, %c0_i32_0 : i32, i32, i32
  }
}

module attributes {stable_mosaic.version = 11 : i64} {
  func.func @_resblock1d_kernel(%arg0: i32, %arg1: memref<2x16x4xbf16, #tpu.memory_space<vmem>>, %arg2: memref<2x8x8xbf16, #tpu.memory_space<vmem>>, %arg3: memref<3x4x128xbf16, #tpu.memory_space<vmem>>, %arg4: memref<384x128xbf16, #tpu.memory_space<vmem>>, %arg5: memref<4x128xbf16, #tpu.memory_space<vmem>>, %arg6: memref<1x128xf32, #tpu.memory_space<vmem>>, %arg7: memref<1x128xf32, #tpu.memory_space<vmem>>, %arg8: memref<1x128xf32, #tpu.memory_space<vmem>>, %arg9: memref<2x8x128xf32, #tpu.memory_space<vmem>>, %arg10: memref<2x8x128xf32, #tpu.memory_space<vmem>>) attributes {dimension_semantics = [#tpu.dimension_semantics<parallel>], iteration_bounds = array<i64: 1>, scalar_prefetch = 0 : i64, scratch_operands = 0 : i64, tpu.core_type = #tpu.core_type<tc>, window_params = [{transform_indices = @transform_0, window_bounds = array<i64: 2, 16, 4>}, {transform_indices = @transform_1, window_bounds = array<i64: 2, 8, 8>}, {pipeline_mode = #tpu.pipeline_mode<synchronous>, transform_indices = @transform_2, window_bounds = array<i64: 3, 4, 128>}, {pipeline_mode = #tpu.pipeline_mode<synchronous>, transform_indices = @transform_3, window_bounds = array<i64: 384, 128>}, {pipeline_mode = #tpu.pipeline_mode<synchronous>, transform_indices = @transform_4, window_bounds = array<i64: 4, 128>}, {pipeline_mode = #tpu.pipeline_mode<synchronous>, transform_indices = @transform_5, window_bounds = array<i64: 1, 128>}, {pipeline_mode = #tpu.pipeline_mode<synchronous>, transform_indices = @transform_6, window_bounds = array<i64: 1, 128>}, {pipeline_mode = #tpu.pipeline_mode<synchronous>, transform_indices = @transform_7, window_bounds = array<i64: 1, 128>}, {transform_indices = @transform_8, window_bounds = array<i64: 2, 8, 128>}, {transform_indices = @transform_9, window_bounds = array<i64: 2, 8, 128>}]} {
    %c0 = arith.constant 0 : index
    %c0_0 = arith.constant 0 : index
    %0 = vector.load %arg6[%c0, %c0_0] : memref<1x128xf32, #tpu.memory_space<vmem>>, vector<1x128xf32>
    %c0_1 = arith.constant 0 : index
    %c0_2 = arith.constant 0 : index
    %1 = vector.load %arg7[%c0_1, %c0_2] : memref<1x128xf32, #tpu.memory_space<vmem>>, vector<1x128xf32>
    %c0_3 = arith.constant 0 : index
    %c0_4 = arith.constant 0 : index
    %2 = vector.load %arg8[%c0_3, %c0_4] : memref<1x128xf32, #tpu.memory_space<vmem>>, vector<1x128xf32>
    %c0_5 = arith.constant 0 : index
    %c0_6 = arith.constant 0 : index
    %c0_7 = arith.constant 0 : index
    %3 = vector.load %arg1[%c0_5, %c0_6, %c0_7] : memref<2x16x4xbf16, #tpu.memory_space<vmem>>, vector<1x16x4xbf16>
    %4 = vector.shape_cast %3 : vector<1x16x4xbf16> to vector<16x4xbf16>
    %cst = arith.constant 0.000000e+00 : bf16
    %5 = vector.broadcast %cst : bf16 to vector<1x4xbf16>
    %cst_8 = arith.constant 0.000000e+00 : bf16
    %6 = vector.broadcast %cst_8 : bf16 to vector<1x4xbf16>
    %7 = tpu.concatenate %5, %4, %6 in 0 : vector<1x4xbf16>, vector<16x4xbf16>, vector<1x4xbf16> -> vector<18x4xbf16>
    %8 = vector.extract_strided_slice %7 {offsets = [0, 0], sizes = [16, 4], strides = [1, 1]} : vector<18x4xbf16> to vector<16x4xbf16>
    %c0_9 = arith.constant 0 : index
    %c0_10 = arith.constant 0 : index
    %c0_11 = arith.constant 0 : index
    %9 = vector.load %arg3[%c0_9, %c0_10, %c0_11] : memref<3x4x128xbf16, #tpu.memory_space<vmem>>, vector<1x4x128xbf16>
    %10 = vector.shape_cast %9 : vector<1x4x128xbf16> to vector<4x128xbf16>
    %cst_12 = arith.constant dense<0.000000e+00> : vector<16x128xf32>
    %11 = tpu.matmul %8, %10, %cst_12 {dimension_numbers = #tpu.dot_dimension_numbers<[1], [0], [0], [1], [0, 0, 1, 1], [], []>} : vector<16x4xbf16>, vector<4x128xbf16>, vector<16x128xf32> -> vector<16x128xf32>
    %12 = vector.extract_strided_slice %7 {offsets = [1, 0], sizes = [16, 4], strides = [1, 1]} : vector<18x4xbf16> to vector<16x4xbf16>
    %c1 = arith.constant 1 : index
    %c0_13 = arith.constant 0 : index
    %c0_14 = arith.constant 0 : index
    %13 = vector.load %arg3[%c1, %c0_13, %c0_14] : memref<3x4x128xbf16, #tpu.memory_space<vmem>>, vector<1x4x128xbf16>
    %14 = vector.shape_cast %13 : vector<1x4x128xbf16> to vector<4x128xbf16>
    %cst_15 = arith.constant dense<0.000000e+00> : vector<16x128xf32>
    %15 = tpu.matmul %12, %14, %cst_15 {dimension_numbers = #tpu.dot_dimension_numbers<[1], [0], [0], [1], [0, 0, 1, 1], [], []>} : vector<16x4xbf16>, vector<4x128xbf16>, vector<16x128xf32> -> vector<16x128xf32>
    %16 = arith.addf %11, %15 : vector<16x128xf32>
    %17 = vector.extract_strided_slice %7 {offsets = [2, 0], sizes = [16, 4], strides = [1, 1]} : vector<18x4xbf16> to vector<16x4xbf16>
    %c2 = arith.constant 2 : index
    %c0_16 = arith.constant 0 : index
    %c0_17 = arith.constant 0 : index
    %18 = vector.load %arg3[%c2, %c0_16, %c0_17] : memref<3x4x128xbf16, #tpu.memory_space<vmem>>, vector<1x4x128xbf16>
    %19 = vector.shape_cast %18 : vector<1x4x128xbf16> to vector<4x128xbf16>
    %cst_18 = arith.constant dense<0.000000e+00> : vector<16x128xf32>
    %20 = tpu.matmul %17, %19, %cst_18 {dimension_numbers = #tpu.dot_dimension_numbers<[1], [0], [0], [1], [0, 0, 1, 1], [], []>} : vector<16x4xbf16>, vector<4x128xbf16>, vector<16x128xf32> -> vector<16x128xf32>
    %21 = arith.addf %16, %20 : vector<16x128xf32>
    %22 = vector.broadcast %0 : vector<1x128xf32> to vector<16x128xf32>
    %23 = arith.addf %21, %22 : vector<16x128xf32>
    %cst_19 = arith.constant 0.000000e+00 : f32
    %24 = vector.broadcast %cst_19 : f32 to vector<16x128xf32>
    %25 = arith.maximumf %23, %24 : vector<16x128xf32>
    %26 = arith.truncf %25 : vector<16x128xf32> to vector<16x128xbf16>
    %cst_20 = arith.constant 0.000000e+00 : bf16
    %27 = vector.broadcast %cst_20 : bf16 to vector<1x128xbf16>
    %cst_21 = arith.constant 0.000000e+00 : bf16
    %28 = vector.broadcast %cst_21 : bf16 to vector<1x128xbf16>
    %29 = tpu.concatenate %27, %26, %28 in 0 : vector<1x128xbf16>, vector<16x128xbf16>, vector<1x128xbf16> -> vector<18x128xbf16>
    %30 = vector.shape_cast %29 : vector<18x128xbf16> to vector<9x256xbf16>
    %31 = vector.extract_strided_slice %30 {offsets = [0, 0], sizes = [8, 256], strides = [1, 1]} : vector<9x256xbf16> to vector<8x256xbf16>
    %c0_22 = arith.constant 0 : index
    %c0_23 = arith.constant 0 : index
    %32 = vector.load %arg4[%c0_22, %c0_23] : memref<384x128xbf16, #tpu.memory_space<vmem>>, vector<256x128xbf16>
    %cst_24 = arith.constant dense<0.000000e+00> : vector<8x128xf32>
    %33 = tpu.matmul %31, %32, %cst_24 {dimension_numbers = #tpu.dot_dimension_numbers<[1], [0], [0], [1], [0, 0, 1, 1], [], []>} : vector<8x256xbf16>, vector<256x128xbf16>, vector<8x128xf32> -> vector<8x128xf32>
    %34 = vector.extract_strided_slice %30 {offsets = [1, 0], sizes = [8, 128], strides = [1, 1]} : vector<9x256xbf16> to vector<8x128xbf16>
    %c256 = arith.constant 256 : index
    %c0_25 = arith.constant 0 : index
    %35 = vector.load %arg4[%c256, %c0_25] : memref<384x128xbf16, #tpu.memory_space<vmem>>, vector<128x128xbf16>
    %cst_26 = arith.constant dense<0.000000e+00> : vector<8x128xf32>
    %36 = tpu.matmul %34, %35, %cst_26 {dimension_numbers = #tpu.dot_dimension_numbers<[1], [0], [0], [1], [0, 0, 1, 1], [], []>} : vector<8x128xbf16>, vector<128x128xbf16>, vector<8x128xf32> -> vector<8x128xf32>
    %37 = arith.addf %33, %36 : vector<8x128xf32>
    %c0_27 = arith.constant 0 : index
    %c0_28 = arith.constant 0 : index
    %c0_29 = arith.constant 0 : index
    %38 = vector.load %arg2[%c0_27, %c0_28, %c0_29] : memref<2x8x8xbf16, #tpu.memory_space<vmem>>, vector<1x8x8xbf16>
    %39 = vector.shape_cast %38 : vector<1x8x8xbf16> to vector<8x8xbf16>
    %40 = vector.extract_strided_slice %39 {offsets = [0, 0], sizes = [8, 4], strides = [1, 1]} : vector<8x8xbf16> to vector<8x4xbf16>
    %41 = vector.extract_strided_slice %39 {offsets = [0, 4], sizes = [8, 4], strides = [1, 1]} : vector<8x8xbf16> to vector<8x4xbf16>
    %42 = arith.maximumf %40, %41 : vector<8x4xbf16>
    %c0_30 = arith.constant 0 : index
    %c0_31 = arith.constant 0 : index
    %43 = vector.load %arg5[%c0_30, %c0_31] : memref<4x128xbf16, #tpu.memory_space<vmem>>, vector<4x128xbf16>
    %cst_32 = arith.constant dense<0.000000e+00> : vector<8x128xf32>
    %44 = tpu.matmul %42, %43, %cst_32 {dimension_numbers = #tpu.dot_dimension_numbers<[1], [0], [0], [1], [0, 0, 1, 1], [], []>} : vector<8x4xbf16>, vector<4x128xbf16>, vector<8x128xf32> -> vector<8x128xf32>
    %45 = arith.addf %37, %44 : vector<8x128xf32>
    %c0_33 = arith.constant 0 : index
    %c0_34 = arith.constant 0 : index
    %c0_35 = arith.constant 0 : index
    %46 = vector.load %arg10[%c0_33, %c0_34, %c0_35] : memref<2x8x128xf32, #tpu.memory_space<vmem>>, vector<1x8x128xf32>
    %47 = vector.shape_cast %46 : vector<1x8x128xf32> to vector<8x128xf32>
    %48 = vector.shape_cast %45 : vector<8x128xf32> to vector<1x8x128xf32>
    tpu.vector_store %arg10[%c0_33, %c0_34, %c0_35], %48 {strides = array<i32>} : memref<2x8x128xf32, #tpu.memory_space<vmem>>, vector<1x8x128xf32>,
    %49 = vector.broadcast %1 : vector<1x128xf32> to vector<8x128xf32>
    %50 = arith.mulf %45, %49 : vector<8x128xf32>
    %51 = vector.broadcast %2 : vector<1x128xf32> to vector<8x128xf32>
    %52 = arith.addf %50, %51 : vector<8x128xf32>
    %cst_36 = arith.constant 0.000000e+00 : f32
    %53 = vector.broadcast %cst_36 : f32 to vector<8x128xf32>
    %54 = arith.maximumf %52, %53 : vector<8x128xf32>
    %c0_37 = arith.constant 0 : index
    %c0_38 = arith.constant 0 : index
    %c0_39 = arith.constant 0 : index
    %55 = vector.load %arg9[%c0_37, %c0_38, %c0_39] : memref<2x8x128xf32, #tpu.memory_space<vmem>>, vector<1x8x128xf32>
    %56 = vector.shape_cast %55 : vector<1x8x128xf32> to vector<8x128xf32>
    %57 = vector.shape_cast %54 : vector<8x128xf32> to vector<1x8x128xf32>
    tpu.vector_store %arg9[%c0_37, %c0_38, %c0_39], %57 {strides = array<i32>} : memref<2x8x128xf32, #tpu.memory_space<vmem>>, vector<1x8x128xf32>,
    %c1_40 = arith.constant 1 : index
    %c0_41 = arith.constant 0 : index
    %c0_42 = arith.constant 0 : index
    %58 = vector.load %arg1[%c1_40, %c0_41, %c0_42] : memref<2x16x4xbf16, #tpu.memory_space<vmem>>, vector<1x16x4xbf16>
    %59 = vector.shape_cast %58 : vector<1x16x4xbf16> to vector<16x4xbf16>
    %cst_43 = arith.constant 0.000000e+00 : bf16
    %60 = vector.broadcast %cst_43 : bf16 to vector<1x4xbf16>
    %cst_44 = arith.constant 0.000000e+00 : bf16
    %61 = vector.broadcast %cst_44 : bf16 to vector<1x4xbf16>
    %62 = tpu.concatenate %60, %59, %61 in 0 : vector<1x4xbf16>, vector<16x4xbf16>, vector<1x4xbf16> -> vector<18x4xbf16>
    %63 = vector.extract_strided_slice %62 {offsets = [0, 0], sizes = [16, 4], strides = [1, 1]} : vector<18x4xbf16> to vector<16x4xbf16>
    %c0_45 = arith.constant 0 : index
    %c0_46 = arith.constant 0 : index
    %c0_47 = arith.constant 0 : index
    %64 = vector.load %arg3[%c0_45, %c0_46, %c0_47] : memref<3x4x128xbf16, #tpu.memory_space<vmem>>, vector<1x4x128xbf16>
    %65 = vector.shape_cast %64 : vector<1x4x128xbf16> to vector<4x128xbf16>
    %cst_48 = arith.constant dense<0.000000e+00> : vector<16x128xf32>
    %66 = tpu.matmul %63, %65, %cst_48 {dimension_numbers = #tpu.dot_dimension_numbers<[1], [0], [0], [1], [0, 0, 1, 1], [], []>} : vector<16x4xbf16>, vector<4x128xbf16>, vector<16x128xf32> -> vector<16x128xf32>
    %67 = vector.extract_strided_slice %62 {offsets = [1, 0], sizes = [16, 4], strides = [1, 1]} : vector<18x4xbf16> to vector<16x4xbf16>
    %c1_49 = arith.constant 1 : index
    %c0_50 = arith.constant 0 : index
    %c0_51 = arith.constant 0 : index
    %68 = vector.load %arg3[%c1_49, %c0_50, %c0_51] : memref<3x4x128xbf16, #tpu.memory_space<vmem>>, vector<1x4x128xbf16>
    %69 = vector.shape_cast %68 : vector<1x4x128xbf16> to vector<4x128xbf16>
    %cst_52 = arith.constant dense<0.000000e+00> : vector<16x128xf32>
    %70 = tpu.matmul %67, %69, %cst_52 {dimension_numbers = #tpu.dot_dimension_numbers<[1], [0], [0], [1], [0, 0, 1, 1], [], []>} : vector<16x4xbf16>, vector<4x128xbf16>, vector<16x128xf32> -> vector<16x128xf32>
    %71 = arith.addf %66, %70 : vector<16x128xf32>
    %72 = vector.extract_strided_slice %62 {offsets = [2, 0], sizes = [16, 4], strides = [1, 1]} : vector<18x4xbf16> to vector<16x4xbf16>
    %c2_53 = arith.constant 2 : index
    %c0_54 = arith.constant 0 : index
    %c0_55 = arith.constant 0 : index
    %73 = vector.load %arg3[%c2_53, %c0_54, %c0_55] : memref<3x4x128xbf16, #tpu.memory_space<vmem>>, vector<1x4x128xbf16>
    %74 = vector.shape_cast %73 : vector<1x4x128xbf16> to vector<4x128xbf16>
    %cst_56 = arith.constant dense<0.000000e+00> : vector<16x128xf32>
    %75 = tpu.matmul %72, %74, %cst_56 {dimension_numbers = #tpu.dot_dimension_numbers<[1], [0], [0], [1], [0, 0, 1, 1], [], []>} : vector<16x4xbf16>, vector<4x128xbf16>, vector<16x128xf32> -> vector<16x128xf32>
    %76 = arith.addf %71, %75 : vector<16x128xf32>
    %77 = vector.broadcast %0 : vector<1x128xf32> to vector<16x128xf32>
    %78 = arith.addf %76, %77 : vector<16x128xf32>
    %cst_57 = arith.constant 0.000000e+00 : f32
    %79 = vector.broadcast %cst_57 : f32 to vector<16x128xf32>
    %80 = arith.maximumf %78, %79 : vector<16x128xf32>
    %81 = arith.truncf %80 : vector<16x128xf32> to vector<16x128xbf16>
    %cst_58 = arith.constant 0.000000e+00 : bf16
    %82 = vector.broadcast %cst_58 : bf16 to vector<1x128xbf16>
    %cst_59 = arith.constant 0.000000e+00 : bf16
    %83 = vector.broadcast %cst_59 : bf16 to vector<1x128xbf16>
    %84 = tpu.concatenate %82, %81, %83 in 0 : vector<1x128xbf16>, vector<16x128xbf16>, vector<1x128xbf16> -> vector<18x128xbf16>
    %85 = vector.shape_cast %84 : vector<18x128xbf16> to vector<9x256xbf16>
    %86 = vector.extract_strided_slice %85 {offsets = [0, 0], sizes = [8, 256], strides = [1, 1]} : vector<9x256xbf16> to vector<8x256xbf16>
    %c0_60 = arith.constant 0 : index
    %c0_61 = arith.constant 0 : index
    %87 = vector.load %arg4[%c0_60, %c0_61] : memref<384x128xbf16, #tpu.memory_space<vmem>>, vector<256x128xbf16>
    %cst_62 = arith.constant dense<0.000000e+00> : vector<8x128xf32>
    %88 = tpu.matmul %86, %87, %cst_62 {dimension_numbers = #tpu.dot_dimension_numbers<[1], [0], [0], [1], [0, 0, 1, 1], [], []>} : vector<8x256xbf16>, vector<256x128xbf16>, vector<8x128xf32> -> vector<8x128xf32>
    %89 = vector.extract_strided_slice %85 {offsets = [1, 0], sizes = [8, 128], strides = [1, 1]} : vector<9x256xbf16> to vector<8x128xbf16>
    %c256_63 = arith.constant 256 : index
    %c0_64 = arith.constant 0 : index
    %90 = vector.load %arg4[%c256_63, %c0_64] : memref<384x128xbf16, #tpu.memory_space<vmem>>, vector<128x128xbf16>
    %cst_65 = arith.constant dense<0.000000e+00> : vector<8x128xf32>
    %91 = tpu.matmul %89, %90, %cst_65 {dimension_numbers = #tpu.dot_dimension_numbers<[1], [0], [0], [1], [0, 0, 1, 1], [], []>} : vector<8x128xbf16>, vector<128x128xbf16>, vector<8x128xf32> -> vector<8x128xf32>
    %92 = arith.addf %88, %91 : vector<8x128xf32>
    %c1_66 = arith.constant 1 : index
    %c0_67 = arith.constant 0 : index
    %c0_68 = arith.constant 0 : index
    %93 = vector.load %arg2[%c1_66, %c0_67, %c0_68] : memref<2x8x8xbf16, #tpu.memory_space<vmem>>, vector<1x8x8xbf16>
    %94 = vector.shape_cast %93 : vector<1x8x8xbf16> to vector<8x8xbf16>
    %95 = vector.extract_strided_slice %94 {offsets = [0, 0], sizes = [8, 4], strides = [1, 1]} : vector<8x8xbf16> to vector<8x4xbf16>
    %96 = vector.extract_strided_slice %94 {offsets = [0, 4], sizes = [8, 4], strides = [1, 1]} : vector<8x8xbf16> to vector<8x4xbf16>
    %97 = arith.maximumf %95, %96 : vector<8x4xbf16>
    %c0_69 = arith.constant 0 : index
    %c0_70 = arith.constant 0 : index
    %98 = vector.load %arg5[%c0_69, %c0_70] : memref<4x128xbf16, #tpu.memory_space<vmem>>, vector<4x128xbf16>
    %cst_71 = arith.constant dense<0.000000e+00> : vector<8x128xf32>
    %99 = tpu.matmul %97, %98, %cst_71 {dimension_numbers = #tpu.dot_dimension_numbers<[1], [0], [0], [1], [0, 0, 1, 1], [], []>} : vector<8x4xbf16>, vector<4x128xbf16>, vector<8x128xf32> -> vector<8x128xf32>
    %100 = arith.addf %92, %99 : vector<8x128xf32>
    %c1_72 = arith.constant 1 : index
    %c0_73 = arith.constant 0 : index
    %c0_74 = arith.constant 0 : index
    %101 = vector.load %arg10[%c1_72, %c0_73, %c0_74] : memref<2x8x128xf32, #tpu.memory_space<vmem>>, vector<1x8x128xf32>
    %102 = vector.shape_cast %101 : vector<1x8x128xf32> to vector<8x128xf32>
    %103 = vector.shape_cast %100 : vector<8x128xf32> to vector<1x8x128xf32>
    tpu.vector_store %arg10[%c1_72, %c0_73, %c0_74], %103 {strides = array<i32>} : memref<2x8x128xf32, #tpu.memory_space<vmem>>, vector<1x8x128xf32>,
    %104 = vector.broadcast %1 : vector<1x128xf32> to vector<8x128xf32>
    %105 = arith.mulf %100, %104 : vector<8x128xf32>
    %106 = vector.broadcast %2 : vector<1x128xf32> to vector<8x128xf32>
    %107 = arith.addf %105, %106 : vector<8x128xf32>
    %cst_75 = arith.constant 0.000000e+00 : f32
    %108 = vector.broadcast %cst_75 : f32 to vector<8x128xf32>
    %109 = arith.maximumf %107, %108 : vector<8x128xf32>
    %c1_76 = arith.constant 1 : index
    %c0_77 = arith.constant 0 : index
    %c0_78 = arith.constant 0 : index
    %110 = vector.load %arg9[%c1_76, %c0_77, %c0_78] : memref<2x8x128xf32, #tpu.memory_space<vmem>>, vector<1x8x128xf32>
    %111 = vector.shape_cast %110 : vector<1x8x128xf32> to vector<8x128xf32>
    %112 = vector.shape_cast %109 : vector<8x128xf32> to vector<1x8x128xf32>
    tpu.vector_store %arg9[%c1_76, %c0_77, %c0_78], %112 {strides = array<i32>} : memref<2x8x128xf32, #tpu.memory_space<vmem>>, vector<1x8x128xf32>,
    return
  }
  func.func @transform_0(%arg0: i32) -> (i32, i32, i32) {
    %c0_i32 = arith.constant 0 : i32
    %c0_i32_0 = arith.constant 0 : i32
    %c0_i32_1 = arith.constant 0 : i32
    return %arg0, %c0_i32, %c0_i32_0 : i32, i32, i32
  }
  func.func @transform_1(%arg0: i32) -> (i32, i32, i32) {
    %c0_i32 = arith.constant 0 : i32
    %c0_i32_0 = arith.constant 0 : i32
    %c0_i32_1 = arith.constant 0 : i32
    return %arg0, %c0_i32, %c0_i32_0 : i32, i32, i32
  }
  func.func @transform_2(%arg0: i32) -> (i32, i32, i32) {
    %c0_i32 = arith.constant 0 : i32
    %c0_i32_0 = arith.constant 0 : i32
    %c0_i32_1 = arith.constant 0 : i32
    %c0_i32_2 = arith.constant 0 : i32
    return %c0_i32, %c0_i32_0, %c0_i32_1 : i32, i32, i32
  }
  func.func @transform_3(%arg0: i32) -> (i32, i32) {
    %c0_i32 = arith.constant 0 : i32
    %c0_i32_0 = arith.constant 0 : i32
    %c0_i32_1 = arith.constant 0 : i32
    return %c0_i32, %c0_i32_0 : i32, i32
  }
  func.func @transform_4(%arg0: i32) -> (i32, i32) {
    %c0_i32 = arith.constant 0 : i32
    %c0_i32_0 = arith.constant 0 : i32
    %c0_i32_1 = arith.constant 0 : i32
    return %c0_i32, %c0_i32_0 : i32, i32
  }
  func.func @transform_5(%arg0: i32) -> (i32, i32) {
    %c0_i32 = arith.constant 0 : i32
    %c0_i32_0 = arith.constant 0 : i32
    %c0_i32_1 = arith.constant 0 : i32
    return %c0_i32, %c0_i32_0 : i32, i32
  }
  func.func @transform_6(%arg0: i32) -> (i32, i32) {
    %c0_i32 = arith.constant 0 : i32
    %c0_i32_0 = arith.constant 0 : i32
    %c0_i32_1 = arith.constant 0 : i32
    return %c0_i32, %c0_i32_0 : i32, i32
  }
  func.func @transform_7(%arg0: i32) -> (i32, i32) {
    %c0_i32 = arith.constant 0 : i32
    %c0_i32_0 = arith.constant 0 : i32
    %c0_i32_1 = arith.constant 0 : i32
    return %c0_i32, %c0_i32_0 : i32, i32
  }
  func.func @transform_8(%arg0: i32) -> (i32, i32, i32) {
    %c0_i32 = arith.constant 0 : i32
    %c0_i32_0 = arith.constant 0 : i32
    %c0_i32_1 = arith.constant 0 : i32
    return %arg0, %c0_i32, %c0_i32_0 : i32, i32, i32
  }
  func.func @transform_9(%arg0: i32) -> (i32, i32, i32) {
    %c0_i32 = arith.constant 0 : i32
    %c0_i32_0 = arith.constant 0 : i32
    %c0_i32_1 = arith.constant 0 : i32
    return %arg0, %c0_i32, %c0_i32_0 : i32, i32, i32
  }
}

</mosaic_0001>

<bundles_post_ra>
// kernel: _forward_impl.1
= control target key start
LH: loop header
LB: loop body
LE: loop exit
PB: predicated region body
PF: predicated region fallthrough
CT: control target
= control target key end

     0   :  { %vm76_vm0 = vcmask 1041408   ;;  %vm51_vm1 = vcmask 1040384   ;;  %vm52_vm2 = vsmask.f32 256  ;;  %s1148_s19 = smov 124   ;;  %vm72_vm4 = vcmask 31744   ;;  %s1465_s2 = inlined_call_operand.vmem [shape: bf16[3,4,128], index: 2, kind: input, shape index: {}]   ;;  %s1466_s0 = inlined_call_operand.vmem [shape: bf16[2,16,4], index: 0, kind: input, shape index: {}]   ;;  %s1467_s1 = inlined_call_operand.vmem [shape: bf16[2,8,8], index: 1, kind: input, shape index: {}]   ;;  %s1468_s5 = inlined_call_operand.vmem [shape: f32[1,128], index: 5, kind: input, shape index: {}]   ;;  %s1469_s3 = inlined_call_operand.vmem [shape: bf16[384,128], index: 3, kind: input, shape index: {}]   ;;  %s1470_s4 = inlined_call_operand.vmem [shape: bf16[4,128], index: 4, kind: input, shape index: {}]   ;;  %s1471_s6 = inlined_call_operand.vmem [shape: f32[1,128], index: 6, kind: input, shape index: {}]   ;;  %s1472_s7 = inlined_call_operand.vmem [shape: f32[1,128], index: 7, kind: input, shape index: {}]   ;;  %s1473_s9 = inlined_call_operand.vmem [shape: f32[2,8,128], index: 9, kind: output, shape index: {1}]   ;;  %s1474_s8 = inlined_call_operand.vmem [shape: f32[2,8,128], index: 8, kind: output, shape index: {0}]  }
   0x1   :  { %v56_v0 = vld [vmem:[%s1465_s2] sm:$0x3]  ;;  %v880_v3 = vld [vmem:[%s1465_s2 + $0x4] sm:$0x3]  ;;  %v877_v4 = vld [vmem:[%s1465_s2 + $0x2] sm:$0x3] }
   0x2   :  { %v1094_v1 = vld [vmem:[%s1466_s0] sm:$0xff]  ;;  %v97_v2 = vsel %vm76_vm0, %v56_v0, 0  ;;  %v125_v8 = vsel %vm76_vm0, %v880_v3, 0  ;;  %v78_v9 = vsel %vm76_vm0, %v877_v4, 0  ;;  %vm1219_vm3 = vmand %vm51_vm1, %vm52_vm2  ;;  %vm117_vm5 = vcmask 1046528   ;;  %v1102_v26 = vld [vmem:[%s1469_s3 + $0x38] sm:$0xff] }
   0x3   :  { %v1215_v5 = vld [vmem:[%s1467_s1] sm:$0xff]   ;;  %106 = vmatpush.bf16.msra.mxu1 %v97_v2  ;;  %v43_v6 = vshrl.u32 %v1094_v1, 16  ;;  %v46_v7 = vshll.u32 %v1094_v1, 16  ;;  %134 = vmatpush.bf16.msra.mxu2 %v125_v8  ;;  %vm59_vm6 = vsmask.f32 7424  ;;  %v1110_v27 = vld [vmem:[%s1469_s3 + $0x78] sm:$0xff] }
   0x4   :  { %87 = vmatpush.bf16.msra.mxu0 %v78_v9  ;;  %v418_v11 = vunpack.c.l.bf16 %v1215_v5  ;;  %v1101_v28 = vld [vmem:[%s1469_s3 + $0x30] sm:$0xff]  ;;  %v1118_v29 = vld [vmem:[%s1469_s3 + $0xb8] sm:$0xff]  ;;  %v1100_v31 = vld [vmem:[%s1469_s3 + $0x28] sm:$0xff] }
   0x5   :  { %v45_v12 = vrot.slane %v43_v6, 7  ;;  %v1109_v30 = vld [vmem:[%s1469_s3 + $0x70] sm:$0xff]  ;;  %278 = vmatpush.bf16.msra.mxu3 %v1118_v29  ;;  %v1108_v33 = vld [vmem:[%s1469_s3 + $0x68] sm:$0xff]  ;;  %v1099_v34 = vld [vmem:[%s1469_s3 + $0x20] sm:$0xff] }
   0x6   :  { %420 = vrot.lane.b32.xlu0 %v418_v11, %s1148_s19  ;;  %v1117_v32 = vld [vmem:[%s1469_s3 + $0xb0] sm:$0xff]  ;;  %v1116_v35 = vld [vmem:[%s1469_s3 + $0xa8] sm:$0xff]  ;;  %v1107_v36 = vld [vmem:[%s1469_s3 + $0x60] sm:$0xff] }
   0x7   :  { %v48_v13 = vor.u32 %v46_v7, %v45_v12  ;;  %v55_v14 = vsel %vm1219_vm3, %v45_v12, 0  ;;  %404 = vmatpush.bf16.msrb.mxu1 %v1110_v27  ;;  %v1098_v37 = vld [vmem:[%s1469_s3 + $0x18] sm:$0xff]  ;;  %v1115_v38 = vld [vmem:[%s1469_s3 + $0xa0] sm:$0xff]  ;;  %v1097_v40 = vld [vmem:[%s1469_s3 + $0x10] sm:$0xff] }
   0x8   :  { %v119_v15 = vrot.slane %v55_v14, 1  ;;  %v68_v16 = vshll.u32 %v55_v14, 16  ;;  %391 = vmatpush.bf16.msrb.mxu0 %v1102_v26  ;;  %v1106_v39 = vld [vmem:[%s1469_s3 + $0x58] sm:$0xff]  ;;  %v1105_v42 = vld [vmem:[%s1469_s3 + $0x50] sm:$0xff]  ;;  %v1096_v43 = vld [vmem:[%s1469_s3 + $0x8] sm:$0xff] }
   0x9   :  { %v54_v17 = vsel %vm1219_vm3, 0, %v48_v13  ;;  %279 = vmatpush.bf16.msra.mxu3 %v1117_v32  ;;  %v1114_v41 = vld [vmem:[%s1469_s3 + $0x98] sm:$0xff]  ;;  %v425_v44 = vld [vmem:[%s1470_s4] sm:$0x3]  ;;  %v1113_v46 = vld [vmem:[%s1469_s3 + $0x90] sm:$0xff] }
   0xa   :  { %v61_v18 = vshrl.u32 %v54_v17, 16  ;;  %v63_v19 = vshll.u32 %v54_v17, 16  ;;  %879 = vmatmul.msk.bf16.vlgmr.msra.gmra.mxu1 %vm72_vm4, %v54_v17  ;;  %v118_v20 = vrot.slane %v54_v17, 1  ;;  %v70_v23 = vrot.slane %v68_v16, 1  ;;  %v1104_v49 = vld [vmem:[%s1469_s3 + $0x48] sm:$0xff]  ;;  %v1095_v50 = vld [vmem:[%s1469_s3] sm:$0xff] }
   0xb   :  { %405 = vmatpush.bf16.msrb.mxu1 %v1109_v30  ;;  %v430_v47 = vsel %vm76_vm0, %v425_v44, 0  ;;  %v1112_v51 = vld [vmem:[%s1469_s3 + $0x88] sm:$0xff]  ;;  %v1103_v53 = vld [vmem:[%s1469_s3 + $0x40] sm:$0xff] }
   0xc   :  { %v65_v21 = vrot.slane %v63_v19, 1  ;;  %v120_v22 = vsel %vm117_vm5, %v118_v20, %v119_v15  ;;  %392 = vmatpush.bf16.msrb.mxu0 %v1101_v28  ;;  %439 = vmatpush.bf16.msrb.mxu2 %v430_v47  ;;  %v1119_v55 = vld [vmem:[%s1466_s0 + $0x8] sm:$0xff]  ;;  %v1111_v59 = vld [vmem:[%s1469_s3 + $0x80] sm:$0xff] }
   0xd   :  { %881 = vmatmul.msk.bf16.vlgmr.msra.gmra.mxu2 %vm72_vm4, %v120_v22  ;;  %280 = vmatpush.bf16.msra.mxu3 %v1116_v35  ;;  %v466_v57 = vshrl.u32 %v1119_v55, 16  ;;  %v469_v62 = vshll.u32 %v1119_v55, 16  ;;  %v1321_v0 = vld [vmem:[%s1468_s5] ss:$0 sm:$0xff]  ;;  %v987_v2 = vld [vmem:[%s1465_s2 + $0x2] sm:$0x3] }
   0xe   :  { %v66_v24 = vor.u32 %v65_v21, %v61_v18  ;;  %v476_v3 = vld [vmem:[%s1465_s2] sm:$0x3]  ;;  %v494_v8 = vsel %vm76_vm0, %v987_v2, 0  ;;  %v1126_v55 = vld [vmem:[%s1469_s3 + $0x30] sm:$0xff]  ;;  %v1141_v2 = vld [vmem:[%s1469_s3 + $0xa8] sm:$0xff] }
   0xf   :  { %406 = vmatpush.bf16.msrb.mxu1 %v1108_v33  ;;  %v468_v61 = vrot.slane %v466_v57, 7  ;;  %v513_v9 = vsel %vm76_vm0, %v476_v3, 0  ;;  %v830_v33 = vunpack.c.h.bf16 %v1215_v5  ;;  %v1143_v57 = vld [vmem:[%s1469_s3 + $0xb8] sm:$0xff]  ;;  %v1132_v3 = vld [vmem:[%s1469_s3 + $0x60] sm:$0xff] }
  0x10   :  { %v71_v25 = vsel %vm59_vm6, %v66_v24, %v70_v23  ;;  %393 = vmatpush.bf16.msrb.mxu0 %v1100_v31  ;;  %503 = vmatpush.bf16.msra.mxu2 %v494_v8 }
  0x11   :  { %878 = vmatmul.msk.bf16.vlgmr.msra.gmra.mxu0 %vm72_vm4, %v71_v25  ;;  %281 = vmatpush.bf16.msra.mxu3 %v1115_v38  ;;  %v471_v1 = vor.u32 %v469_v62, %v468_v61  ;;  %v475_v6 = vsel %vm1219_vm3, %v468_v61, 0  ;;  %v1142_v61 = vld [vmem:[%s1469_s3 + $0xb0] sm:$0xff]  ;;  %v1133_v62 = vld [vmem:[%s1469_s3 + $0x68] sm:$0xff] }
  0x12   :  { %v486_v16 = vshll.u32 %v475_v6, 16  ;;  %832 = vrot.lane.b32.xlu0 %v830_v33, %s1148_s19 }
  0x13   :  { %407 = vmatpush.bf16.msrb.mxu1 %v1107_v36  ;;  %v474_v4 = vsel %vm1219_vm3, 0, %v471_v1 }
  0x14   :  { %394 = vmatpush.bf16.msrb.mxu0 %v1099_v34  ;;  %v479_v14 = vshrl.u32 %v474_v4, 16  ;;  %v481_v15 = vshll.u32 %v474_v4, 16  ;;  %v488_v21 = vrot.slane %v486_v16, 1  ;;  %v1407_v16 = vld [vmem:[%s1472_s7] ss:$0 sm:$0xff] }
  0x15   :  { %282 = vmatpush.bf16.msra.mxu3 %v1114_v41 }
  0x16   :  { %v483_v20 = vrot.slane %v481_v15, 1 }
  0x17   :  { %408 = vmatpush.bf16.msrb.mxu1 %v1106_v39 }
  0x18   :  { %395 = vmatpush.bf16.msrb.mxu0 %v1098_v37  ;;  %v484_v24 = vor.u32 %v483_v20, %v479_v14  ;;  %v1122_v14 = vld [vmem:[%s1469_s3 + $0x10] sm:$0xff] }
  0x19   :  { %283 = vmatpush.bf16.msra.mxu3 %v1113_v46 }
  0x1a   :  { %v489_v26 = vsel %vm59_vm6, %v484_v24, %v488_v21  ;;  %v1121_v21 = vld [vmem:[%s1469_s3 + $0x8] sm:$0xff] }
  0x1b   :  { %409 = vmatpush.bf16.msrb.mxu1 %v1105_v42 }
  0x1c   :  { %396 = vmatpush.bf16.msrb.mxu0 %v1097_v40 }
  0x1d   :  { %284 = vmatpush.bf16.msra.mxu3 %v1112_v51 }
  0x1f   :  { %410 = vmatpush.bf16.msrb.mxu1 %v1104_v49  ;;  %v533_v49 = vrot.slane %v475_v6, 1  ;;  %v1123_v6 = vld [vmem:[%s1469_s3 + $0x18] sm:$0xff] }
  0x20   :  { %397 = vmatpush.bf16.msrb.mxu0 %v1096_v43 }
  0x21   :  { %285 = vmatpush.bf16.msra.mxu3 %v1111_v59 }
  0x23   :  { %411 = vmatpush.bf16.msrb.mxu1 %v1103_v53  ;;  %v1127_v53 = vld [vmem:[%s1469_s3 + $0x38] sm:$0xff] }
  0x24   :  { %398 = vmatpush.bf16.msrb.mxu0 %v1095_v50 }
  0x25   :  { %522 = vmatpush.bf16.msrb.mxu3 %v513_v9  ;;  %v1140_v9 = vld [vmem:[%s1469_s3 + $0xa0] sm:$0xff] }
  0x27   :  { %689 = vmatpush.bf16.msra.mxu1 %v1143_v57 }
  0x2b   :  { %690 = vmatpush.bf16.msra.mxu1 %v1142_v61 }
  0x2f   :  { %691 = vmatpush.bf16.msra.mxu1 %v1141_v2 }
  0x33   :  { %692 = vmatpush.bf16.msra.mxu1 %v1140_v9 }
  0x78   :  { %v421_v45 = vpop.permute.xlu0 %420 }
  0x79   :  { %v423_v48 = vmax.f32 %v418_v11, %v421_v45  ;;  %v990_v11 = vld [vmem:[%s1465_s2 + $0x4] sm:$0x3] }
  0x7a   :  { %v539_v17 = vsel %vm76_vm0, %v990_v11, 0  ;;  %v1131_v11 = vld [vmem:[%s1469_s3 + $0x58] sm:$0xff] }
  0x7b   :  { %v424_v52 = vpack.c.bf16 %v423_v48, %v423_v48  ;;  %548 = vmatpush.bf16.msra.mxu0 %v539_v17  ;;  %v532_v48 = vrot.slane %v474_v4, 1  ;;  %v1139_v17 = vld [vmem:[%s1469_s3 + $0x98] sm:$0xff] }
  0x7c   :  { %693 = vmatpush.bf16.msra.mxu1 %v1139_v17 }
  0x7d   :  { %980 = vmatmul.msk.bf16.vlgmr.msrb.gmra.mxu2 %vm72_vm4, %v424_v52  ;;  %v534_v50 = vsel %vm117_vm5, %v532_v48, %v533_v49 }
  0x7e   :  { %802 = vmatpush.bf16.msrb.mxu2 %v1127_v53 }
  0x82   :  { %803 = vmatpush.bf16.msrb.mxu2 %v1126_v55 }
  0x87   :  { %v108_v54 = vpop.f32.mrf.mxu1 }
  0x8d   :  { %988 = vmatmul.msk.bf16.vlgmr.msra.gmra.mxu2 %vm72_vm4, %v489_v26  ;;  %v1129_v26 = vld [vmem:[%s1469_s3 + $0x48] sm:$0xff] }
  0x8e   :  { %v89_v56 = vpop.f32.mrf.mxu0 }
  0x8f   :  { %v109_v58 = vadd.f32 %v108_v54, %v89_v56  ;;  %v110_v12 = vpop.f32.mrf.mxu1  ;;  %v1135_v54 = vld [vmem:[%s1469_s3 + $0x78] sm:$0xff] }
  0x90   :  { %v136_v60 = vpop.f32.mrf.mxu2 }
  0x91   :  { %v141_v63 = vadd.f32 %v136_v60, %v109_v58  ;;  %v1134_v58 = vld [vmem:[%s1469_s3 + $0x70] sm:$0xff]  ;;  %v1125_v60 = vld [vmem:[%s1469_s3 + $0x28] sm:$0xff] }
  0x92   :  { %804 = vmatpush.bf16.msrb.mxu2 %v1125_v60 }
  0x93   :  { %v146_v7 = vadd.f32 %v1321_v0, %v141_v63  ;;  %v1124_v63 = vld [vmem:[%s1469_s3 + $0x20] sm:$0xff] }
  0x95   :  { %v148_v22 = vmax.f32 %v146_v7, 0.0 }
  0x96   :  { %v91_v13 = vpop.f32.mrf.mxu0  ;;  %805 = vmatpush.bf16.msrb.mxu2 %v1124_v63 }
  0x97   :  { %v111_v18 = vadd.f32 %v110_v12, %v91_v13  ;;  %v150_v27 = vpack.c.bf16 %v148_v22, %v148_v22  ;;  %v1399_v13 = vld [vmem:[%s1471_s6] ss:$0 sm:$0xff] }
  0x98   :  { %v138_v19 = vpop.f32.mrf.mxu2 }
  0x99   :  { %v142_v23 = vadd.f32 %v138_v19, %v111_v18  ;;  %v154_v30 = vunpack.c.l.b16 %v150_v27  ;;  %v1130_v18 = vld [vmem:[%s1469_s3 + $0x50] sm:$0xff]  ;;  %v837_v19 = vld [vmem:[%s1470_s4] sm:$0x3]  ;;  %v833_v27 = vpop.permute.xlu0 %832 }
  0x9a   :  { %806 = vmatpush.bf16.msrb.mxu2 %v1123_v6  ;;  %v842_v24 = vsel %vm76_vm0, %v837_v19, 0 }
  0x9b   :  { %v147_v25 = vadd.f32 %v1321_v0, %v142_v23 }
  0x9d   :  { %v149_v28 = vmax.f32 %v147_v25, 0.0  ;;  %v1138_v25 = vld [vmem:[%s1469_s3 + $0x90] sm:$0xff] }
  0x9e   :  { %807 = vmatpush.bf16.msrb.mxu2 %v1122_v14  ;;  %694 = vmatpush.bf16.msra.mxu1 %v1138_v25 }
  0x9f   :  { %v151_v29 = vpack.c.bf16 %v149_v28, %v149_v28  ;;  %v1120_v28 = vld [vmem:[%s1469_s3] sm:$0xff] }
  0xa1   :  { %v155_v31 = vunpack.c.l.b16 %v151_v29  ;;  %v835_v29 = vmax.f32 %v830_v33, %v833_v27 }
  0xa2   :  { %808 = vmatpush.bf16.msrb.mxu2 %v1121_v21 }
  0xa3   :  { %v156_v32 = vpack.c.b16 %v155_v31, %v154_v30  ;;  %v1137_v31 = vld [vmem:[%s1469_s3 + $0x88] sm:$0xff] }
  0xa4   :  { %695 = vmatpush.bf16.msra.mxu1 %v1137_v31 }
  0xa5   :  { %v158_v34 = vshrl.u32 %v156_v32, 16  ;;  %v161_v36 = vshll.u32 %v156_v32, 16  ;;  %v1128_v32 = vld [vmem:[%s1469_s3 + $0x40] sm:$0xff] }
  0xa6   :  { %809 = vmatpush.bf16.msrb.mxu2 %v1120_v28 }
  0xa7   :  { %v160_v35 = vrot.slane %v158_v34, 7  ;;  %v836_v34 = vpack.c.bf16 %v835_v29, %v835_v29 }
  0xa9   :  { %v163_v37 = vor.u32 %v161_v36, %v160_v35  ;;  %v167_v39 = vsel %vm1219_vm3, %v160_v35, 0 }
  0xab   :  { %v166_v38 = vsel %vm1219_vm3, 0, %v163_v37  ;;  %v1136_v37 = vld [vmem:[%s1469_s3 + $0x80] sm:$0xff] }
  0xac   :  { %v915_v40 = vpack.c.b16 %v166_v38, %v166_v38  ;;  %v170_v41 = vunpack.i.h.s16 %v166_v38  ;;  %v882_v42 = vpack.c.b16 %v167_v39, %v166_v38  ;;  %696 = vmatpush.bf16.msra.mxu1 %v1136_v37 }
  0xae   :  { %399 = vmatmul.bf16.vlgmr.msrb.gmra.mxu0 %v915_v40  ;;  %v292_v43 = vpack.c.b16 %v170_v41, %v170_v41  ;;  %v225_v44 = vshll.u32 %v882_v42, 16  ;;  %v223_v45 = vshrl.u32 %v882_v42, 16 }
  0xaf   :  { %851 = vmatpush.bf16.msrb.mxu0 %v842_v24 }
  0xb0   :  { %412 = vmatmul.bf16.vlgmr.msrb.gmra.mxu1 %v292_v43  ;;  %v227_v46 = vrot.slane %v225_v44, 1 }
  0xb2   :  { %v228_v47 = vor.u32 %v227_v46, %v223_v45 }
  0xb4   :  { %286 = vmatmul.bf16.vlgmr.msra.gmra.mxu3 %v228_v47 }
  0xb5   :  { %815 = vmatpush.bf16.msra.mxu3 %v1135_v54 }
  0xb9   :  { %816 = vmatpush.bf16.msra.mxu3 %v1134_v58 }
  0xbd   :  { %817 = vmatpush.bf16.msra.mxu3 %v1133_v62 }
  0xbe   :  { %991 = vmatmul.msk.bf16.vlgmr.msra.gmra.mxu0 %vm72_vm4, %v534_v50 }
  0xc1   :  { %818 = vmatpush.bf16.msra.mxu3 %v1132_v3 }
  0xc4   :  { %989 = vmatmul.msk.bf16.vlgmr.msrb.gmra.mxu3 %vm72_vm4, %v474_v4 }
  0xc5   :  { %819 = vmatpush.bf16.msra.mxu3 %v1131_v11 }
  0xc9   :  { %820 = vmatpush.bf16.msra.mxu3 %v1130_v18 }
  0xcd   :  { %821 = vmatpush.bf16.msra.mxu3 %v1129_v26 }
  0xce   :  { %1091 = vmatmul.msk.bf16.vlgmr.msrb.gmra.mxu0 %vm72_vm4, %v836_v34 }
  0xd1   :  { %822 = vmatpush.bf16.msra.mxu3 %v1128_v32 }
 0x100   :  { %v441_v51 = vpop.f32.mrf.mxu2 }
 0x108   :  { %v443_v52 = vpop.f32.mrf.mxu2 }
 0x110   :  { %v505_v35 = vpop.f32.mrf.mxu2 }
 0x118   :  { %v507_v40 = vpop.f32.mrf.mxu2 }
 0x12b   :  { %v400_v56 = vpop.f32.mrf.mxu0 }
 0x12d   :  { %v413_v59 = vpop.f32.mrf.mxu1 }
 0x133   :  { %v402_v1 = vpop.f32.mrf.mxu0 }
 0x135   :  { %v415_v4 = vpop.f32.mrf.mxu1 }
 0x137   :  { %v287_v7 = vpop.f32.mrf.mxu3 }
 0x138   :  { %v401_v8 = vadd.f32 %v400_v56, %v287_v7 }
 0x13a   :  { %v414_v12 = vadd.f32 %v413_v59, %v401_v8 }
 0x13b   :  { %v550_v5 = vpop.f32.mrf.mxu0 }
 0x13c   :  { %v445_v15 = vadd.f32 %v441_v51, %v414_v12 }
 0x13e   :  { %v450_v20 = vmul.f32 %v1399_v13, %v445_v15  ;;  %446 = vst [vmem:[%s1473_s9] sm:$0xff] %v445_v15 }
 0x13f   :  { %v289_v22 = vpop.f32.mrf.mxu3 }
 0x140   :  { %v454_v23 = vadd.f32 %v1407_v16, %v450_v20 }
 0x142   :  { %v455_v30 = vmax.f32 %v454_v23, 0.0 }
 0x143   :  { %v552_v43 = vpop.f32.mrf.mxu0 }
 0x144   :  { %456 = vst [vmem:[%s1474_s8] sm:$0xff] %v455_v30 }
 0x147   :  { %v524_v33 = vpop.f32.mrf.mxu3 }
 0x148   :  { %v525_v36 = vadd.f32 %v524_v33, %v505_v35 }
 0x14a   :  { %v555_v38 = vadd.f32 %v550_v5, %v525_v36 }
 0x14b   :  { %v853_v3 = vpop.f32.mrf.mxu0 }
 0x14c   :  { %v557_v39 = vadd.f32 %v1321_v0, %v555_v38 }
 0x14e   :  { %v559_v44 = vmax.f32 %v557_v39, 0.0 }
 0x14f   :  { %v526_v41 = vpop.f32.mrf.mxu3 }
 0x150   :  { %v527_v42 = vadd.f32 %v526_v41, %v507_v40  ;;  %v561_v47 = vpack.c.bf16 %v559_v44, %v559_v44 }
 0x152   :  { %v556_v45 = vadd.f32 %v552_v43, %v527_v42  ;;  %v565_v50 = vunpack.c.l.b16 %v561_v47 }
 0x153   :  { %v855_v4 = vpop.f32.mrf.mxu0 }
 0x154   :  { %v558_v46 = vadd.f32 %v1321_v0, %v556_v45 }
 0x156   :  { %v560_v48 = vmax.f32 %v558_v46, 0.0 }
 0x158   :  { %v562_v49 = vpack.c.bf16 %v560_v48, %v560_v48 }
 0x15a   :  { %v566_v51 = vunpack.c.l.b16 %v562_v49 }
 0x15c   :  { %v567_v52 = vpack.c.b16 %v566_v51, %v565_v50 }
 0x15e   :  { %v569_v53 = vshrl.u32 %v567_v52, 16  ;;  %v572_v55 = vshll.u32 %v567_v52, 16 }
 0x160   :  { %v571_v54 = vrot.slane %v569_v53, 7 }
 0x162   :  { %v574_v56 = vor.u32 %v572_v55, %v571_v54  ;;  %v578_v58 = vsel %vm1219_vm3, %v571_v54, 0 }
 0x164   :  { %v577_v57 = vsel %vm1219_vm3, 0, %v574_v56 }
 0x165   :  { %v1025_v59 = vpack.c.b16 %v577_v57, %v577_v57  ;;  %v581_v60 = vunpack.i.h.s16 %v577_v57  ;;  %v992_v61 = vpack.c.b16 %v578_v58, %v577_v57 }
 0x167   :  { %810 = vmatmul.bf16.vlgmr.msrb.gmra.mxu2 %v1025_v59  ;;  %v703_v0 = vpack.c.b16 %v581_v60, %v581_v60  ;;  %v636_v62 = vshll.u32 %v992_v61, 16  ;;  %v634_v63 = vshrl.u32 %v992_v61, 16 }
 0x169   :  { %823 = vmatmul.bf16.vlgmr.msra.gmra.mxu3 %v703_v0  ;;  %v638_v1 = vrot.slane %v636_v62, 1 }
 0x16b   :  { %v639_v2 = vor.u32 %v638_v1, %v634_v63 }
 0x16d   :  { %697 = vmatmul.bf16.vlgmr.msra.gmra.mxu1 %v639_v2 }
 0x1ea   :  { %v698_v6 = vpop.f32.mrf.mxu1  ;;  %v811_v7 = vpop.f32.mrf.mxu2 }
 0x1eb   :  { %v812_v8 = vadd.f32 %v811_v7, %v698_v6 }
 0x1ec   :  { %v824_v9 = vpop.f32.mrf.mxu3 }
 0x1ed   :  { %v825_v11 = vadd.f32 %v824_v9, %v812_v8 }
 0x1ef   :  { %v857_v10 = vadd.f32 %v853_v3, %v825_v11 }
 0x1f1   :  { %1092 = vst [vmem:[%s1473_s9 + $0x8] sm:$0xff] %v857_v10  ;;  %v860_v12 = vmul.f32 %v1399_v13, %v857_v10 }
 0x1f2   :  { %v700_v14 = vpop.f32.mrf.mxu1  ;;  %v813_v15 = vpop.f32.mrf.mxu2 }
 0x1f3   :  { %v861_v17 = vadd.f32 %v1407_v16, %v860_v12 }
 0x1f4   :  { %v826_v18 = vpop.f32.mrf.mxu3 }
 0x1f5   :  { %v862_v19 = vmax.f32 %v861_v17, 0.0 }
 0x1f7   :  { %1093 = vst [vmem:[%s1474_s8 + $0x8] sm:$0xff] %v862_v19 }

// kernel: _forward_impl.1
= control target key start
LH: loop header
LB: loop body
LE: loop exit
PB: predicated region body
PF: predicated region fallthrough
CT: control target
= control target key end

     0   :  { %vm76_vm0 = vcmask 1041408   ;;  %vm51_vm1 = vcmask 1040384   ;;  %vm52_vm2 = vsmask.f32 256  ;;  %s1148_s19 = smov 124   ;;  %vm72_vm4 = vcmask 31744   ;;  %s1465_s2 = inlined_call_operand.vmem [shape: bf16[3,4,128], index: 2, kind: input, shape index: {}]   ;;  %s1466_s0 = inlined_call_operand.vmem [shape: bf16[2,16,4], index: 0, kind: input, shape index: {}]   ;;  %s1467_s1 = inlined_call_operand.vmem [shape: bf16[2,8,8], index: 1, kind: input, shape index: {}]   ;;  %s1468_s5 = inlined_call_operand.vmem [shape: f32[1,128], index: 5, kind: input, shape index: {}]   ;;  %s1469_s3 = inlined_call_operand.vmem [shape: bf16[384,128], index: 3, kind: input, shape index: {}]   ;;  %s1470_s4 = inlined_call_operand.vmem [shape: bf16[4,128], index: 4, kind: input, shape index: {}]   ;;  %s1471_s6 = inlined_call_operand.vmem [shape: f32[1,128], index: 6, kind: input, shape index: {}]   ;;  %s1472_s7 = inlined_call_operand.vmem [shape: f32[1,128], index: 7, kind: input, shape index: {}]   ;;  %s1473_s9 = inlined_call_operand.vmem [shape: f32[2,8,128], index: 9, kind: output, shape index: {1}]   ;;  %s1474_s8 = inlined_call_operand.vmem [shape: f32[2,8,128], index: 8, kind: output, shape index: {0}]  }
   0x1   :  { %v56_v0 = vld [vmem:[%s1465_s2] sm:$0x3]  ;;  %v880_v3 = vld [vmem:[%s1465_s2 + $0x4] sm:$0x3]  ;;  %v877_v4 = vld [vmem:[%s1465_s2 + $0x2] sm:$0x3] }
   0x2   :  { %v1094_v1 = vld [vmem:[%s1466_s0] sm:$0xff]  ;;  %v97_v2 = vsel %vm76_vm0, %v56_v0, 0  ;;  %v125_v8 = vsel %vm76_vm0, %v880_v3, 0  ;;  %v78_v9 = vsel %vm76_vm0, %v877_v4, 0  ;;  %vm1219_vm3 = vmand %vm51_vm1, %vm52_vm2  ;;  %vm117_vm5 = vcmask 1046528   ;;  %v1102_v26 = vld [vmem:[%s1469_s3 + $0x38] sm:$0xff] }
   0x3   :  { %v1215_v5 = vld [vmem:[%s1467_s1] sm:$0xff]   ;;  %106 = vmatpush.bf16.msra.mxu1 %v97_v2  ;;  %v43_v6 = vshrl.u32 %v1094_v1, 16  ;;  %v46_v7 = vshll.u32 %v1094_v1, 16  ;;  %134 = vmatpush.bf16.msra.mxu2 %v125_v8  ;;  %vm59_vm6 = vsmask.f32 7424  ;;  %v1110_v27 = vld [vmem:[%s1469_s3 + $0x78] sm:$0xff] }
   0x4   :  { %87 = vmatpush.bf16.msra.mxu0 %v78_v9  ;;  %v418_v11 = vunpack.c.l.bf16 %v1215_v5  ;;  %v1101_v28 = vld [vmem:[%s1469_s3 + $0x30] sm:$0xff]  ;;  %v1118_v29 = vld [vmem:[%s1469_s3 + $0xb8] sm:$0xff]  ;;  %v1100_v31 = vld [vmem:[%s1469_s3 + $0x28] sm:$0xff] }
   0x5   :  { %v45_v12 = vrot.slane %v43_v6, 7  ;;  %v1109_v30 = vld [vmem:[%s1469_s3 + $0x70] sm:$0xff]  ;;  %278 = vmatpush.bf16.msra.mxu3 %v1118_v29  ;;  %v1108_v33 = vld [vmem:[%s1469_s3 + $0x68] sm:$0xff]  ;;  %v1099_v34 = vld [vmem:[%s1469_s3 + $0x20] sm:$0xff] }
   0x6   :  { %420 = vrot.lane.b32.xlu0 %v418_v11, %s1148_s19  ;;  %v1117_v32 = vld [vmem:[%s1469_s3 + $0xb0] sm:$0xff]  ;;  %v1116_v35 = vld [vmem:[%s1469_s3 + $0xa8] sm:$0xff]  ;;  %v1107_v36 = vld [vmem:[%s1469_s3 + $0x60] sm:$0xff] }
   0x7   :  { %v48_v13 = vor.u32 %v46_v7, %v45_v12  ;;  %v55_v14 = vsel %vm1219_vm3, %v45_v12, 0  ;;  %404 = vmatpush.bf16.msrb.mxu1 %v1110_v27  ;;  %v1098_v37 = vld [vmem:[%s1469_s3 + $0x18] sm:$0xff]  ;;  %v1115_v38 = vld [vmem:[%s1469_s3 + $0xa0] sm:$0xff]  ;;  %v1097_v40 = vld [vmem:[%s1469_s3 + $0x10] sm:$0xff] }
   0x8   :  { %v119_v15 = vrot.slane %v55_v14, 1  ;;  %v68_v16 = vshll.u32 %v55_v14, 16  ;;  %391 = vmatpush.bf16.msrb.mxu0 %v1102_v26  ;;  %v1106_v39 = vld [vmem:[%s1469_s3 + $0x58] sm:$0xff]  ;;  %v1105_v42 = vld [vmem:[%s1469_s3 + $0x50] sm:$0xff]  ;;  %v1096_v43 = vld [vmem:[%s1469_s3 + $0x8] sm:$0xff] }
   0x9   :  { %v54_v17 = vsel %vm1219_vm3, 0, %v48_v13  ;;  %279 = vmatpush.bf16.msra.mxu3 %v1117_v32  ;;  %v1114_v41 = vld [vmem:[%s1469_s3 + $0x98] sm:$0xff]  ;;  %v425_v44 = vld [vmem:[%s1470_s4] sm:$0x3]  ;;  %v1113_v46 = vld [vmem:[%s1469_s3 + $0x90] sm:$0xff] }
   0xa   :  { %v61_v18 = vshrl.u32 %v54_v17, 16  ;;  %v63_v19 = vshll.u32 %v54_v17, 16  ;;  %879 = vmatmul.msk.bf16.vlgmr.msra.gmra.mxu1 %vm72_vm4, %v54_v17  ;;  %v118_v20 = vrot.slane %v54_v17, 1  ;;  %v70_v23 = vrot.slane %v68_v16, 1  ;;  %v1104_v49 = vld [vmem:[%s1469_s3 + $0x48] sm:$0xff]  ;;  %v1095_v50 = vld [vmem:[%s1469_s3] sm:$0xff] }
   0xb   :  { %405 = vmatpush.bf16.msrb.mxu1 %v1109_v30  ;;  %v430_v47 = vsel %vm76_vm0, %v425_v44, 0  ;;  %v1112_v51 = vld [vmem:[%s1469_s3 + $0x88] sm:$0xff]  ;;  %v1103_v53 = vld [vmem:[%s1469_s3 + $0x40] sm:$0xff] }
   0xc   :  { %v65_v21 = vrot.slane %v63_v19, 1  ;;  %v120_v22 = vsel %vm117_vm5, %v118_v20, %v119_v15  ;;  %392 = vmatpush.bf16.msrb.mxu0 %v1101_v28  ;;  %439 = vmatpush.bf16.msrb.mxu2 %v430_v47  ;;  %v1119_v55 = vld [vmem:[%s1466_s0 + $0x8] sm:$0xff]  ;;  %v1111_v59 = vld [vmem:[%s1469_s3 + $0x80] sm:$0xff] }
   0xd   :  { %881 = vmatmul.msk.bf16.vlgmr.msra.gmra.mxu2 %vm72_vm4, %v120_v22  ;;  %280 = vmatpush.bf16.msra.mxu3 %v1116_v35  ;;  %v466_v57 = vshrl.u32 %v1119_v55, 16  ;;  %v469_v62 = vshll.u32 %v1119_v55, 16  ;;  %v1321_v0 = vld [vmem:[%s1468_s5] ss:$0 sm:$0xff]  ;;  %v987_v2 = vld [vmem:[%s1465_s2 + $0x2] sm:$0x3] }
   0xe   :  { %v66_v24 = vor.u32 %v65_v21, %v61_v18  ;;  %v476_v3 = vld [vmem:[%s1465_s2] sm:$0x3]  ;;  %v494_v8 = vsel %vm76_vm0, %v987_v2, 0  ;;  %v1126_v55 = vld [vmem:[%s1469_s3 + $0x30] sm:$0xff]  ;;  %v1141_v2 = vld [vmem:[%s1469_s3 + $0xa8] sm:$0xff] }
   0xf   :  { %406 = vmatpush.bf16.msrb.mxu1 %v1108_v33  ;;  %v468_v61 = vrot.slane %v466_v57, 7  ;;  %v513_v9 = vsel %vm76_vm0, %v476_v3, 0  ;;  %v830_v33 = vunpack.c.h.bf16 %v1215_v5  ;;  %v1143_v57 = vld [vmem:[%s1469_s3 + $0xb8] sm:$0xff]  ;;  %v1132_v3 = vld [vmem:[%s1469_s3 + $0x60] sm:$0xff] }
  0x10   :  { %v71_v25 = vsel %vm59_vm6, %v66_v24, %v70_v23  ;;  %393 = vmatpush.bf16.msrb.mxu0 %v1100_v31  ;;  %503 = vmatpush.bf16.msra.mxu2 %v494_v8 }
  0x11   :  { %878 = vmatmul.msk.bf16.vlgmr.msra.gmra.mxu0 %vm72_vm4, %v71_v25  ;;  %281 = vmatpush.bf16.msra.mxu3 %v1115_v38  ;;  %v471_v1 = vor.u32 %v469_v62, %v468_v61  ;;  %v475_v6 = vsel %vm1219_vm3, %v468_v61, 0  ;;  %v1142_v61 = vld [vmem:[%s1469_s3 + $0xb0] sm:$0xff]  ;;  %v1133_v62 = vld [vmem:[%s1469_s3 + $0x68] sm:$0xff] }
  0x12   :  { %v486_v16 = vshll.u32 %v475_v6, 16  ;;  %832 = vrot.lane.b32.xlu0 %v830_v33, %s1148_s19 }
  0x13   :  { %407 = vmatpush.bf16.msrb.mxu1 %v1107_v36  ;;  %v474_v4 = vsel %vm1219_vm3, 0, %v471_v1 }
  0x14   :  { %394 = vmatpush.bf16.msrb.mxu0 %v1099_v34  ;;  %v479_v14 = vshrl.u32 %v474_v4, 16  ;;  %v481_v15 = vshll.u32 %v474_v4, 16  ;;  %v488_v21 = vrot.slane %v486_v16, 1  ;;  %v1407_v16 = vld [vmem:[%s1472_s7] ss:$0 sm:$0xff] }
  0x15   :  { %282 = vmatpush.bf16.msra.mxu3 %v1114_v41 }
  0x16   :  { %v483_v20 = vrot.slane %v481_v15, 1 }
  0x17   :  { %408 = vmatpush.bf16.msrb.mxu1 %v1106_v39 }
  0x18   :  { %395 = vmatpush.bf16.msrb.mxu0 %v1098_v37  ;;  %v484_v24 = vor.u32 %v483_v20, %v479_v14  ;;  %v1122_v14 = vld [vmem:[%s1469_s3 + $0x10] sm:$0xff] }
  0x19   :  { %283 = vmatpush.bf16.msra.mxu3 %v1113_v46 }
  0x1a   :  { %v489_v26 = vsel %vm59_vm6, %v484_v24, %v488_v21  ;;  %v1121_v21 = vld [vmem:[%s1469_s3 + $0x8] sm:$0xff] }
  0x1b   :  { %409 = vmatpush.bf16.msrb.mxu1 %v1105_v42 }
  0x1c   :  { %396 = vmatpush.bf16.msrb.mxu0 %v1097_v40 }
  0x1d   :  { %284 = vmatpush.bf16.msra.mxu3 %v1112_v51 }
  0x1f   :  { %410 = vmatpush.bf16.msrb.mxu1 %v1104_v49  ;;  %v533_v49 = vrot.slane %v475_v6, 1  ;;  %v1123_v6 = vld [vmem:[%s1469_s3 + $0x18] sm:$0xff] }
  0x20   :  { %397 = vmatpush.bf16.msrb.mxu0 %v1096_v43 }
  0x21   :  { %285 = vmatpush.bf16.msra.mxu3 %v1111_v59 }
  0x23   :  { %411 = vmatpush.bf16.msrb.mxu1 %v1103_v53  ;;  %v1127_v53 = vld [vmem:[%s1469_s3 + $0x38] sm:$0xff] }
  0x24   :  { %398 = vmatpush.bf16.msrb.mxu0 %v1095_v50 }
  0x25   :  { %522 = vmatpush.bf16.msrb.mxu3 %v513_v9  ;;  %v1140_v9 = vld [vmem:[%s1469_s3 + $0xa0] sm:$0xff] }
  0x27   :  { %689 = vmatpush.bf16.msra.mxu1 %v1143_v57 }
  0x2b   :  { %690 = vmatpush.bf16.msra.mxu1 %v1142_v61 }
  0x2f   :  { %691 = vmatpush.bf16.msra.mxu1 %v1141_v2 }
  0x33   :  { %692 = vmatpush.bf16.msra.mxu1 %v1140_v9 }
  0x78   :  { %v421_v45 = vpop.permute.xlu0 %420 }
  0x79   :  { %v423_v48 = vmax.f32 %v418_v11, %v421_v45  ;;  %v990_v11 = vld [vmem:[%s1465_s2 + $0x4] sm:$0x3] }
  0x7a   :  { %v539_v17 = vsel %vm76_vm0, %v990_v11, 0  ;;  %v1131_v11 = vld [vmem:[%s1469_s3 + $0x58] sm:$0xff] }
  0x7b   :  { %v424_v52 = vpack.c.bf16 %v423_v48, %v423_v48  ;;  %548 = vmatpush.bf16.msra.mxu0 %v539_v17  ;;  %v532_v48 = vrot.slane %v474_v4, 1  ;;  %v1139_v17 = vld [vmem:[%s1469_s3 + $0x98] sm:$0xff] }
  0x7c   :  { %693 = vmatpush.bf16.msra.mxu1 %v1139_v17 }
  0x7d   :  { %980 = vmatmul.msk.bf16.vlgmr.msrb.gmra.mxu2 %vm72_vm4, %v424_v52  ;;  %v534_v50 = vsel %vm117_vm5, %v532_v48, %v533_v49 }
  0x7e   :  { %802 = vmatpush.bf16.msrb.mxu2 %v1127_v53 }
  0x82   :  { %803 = vmatpush.bf16.msrb.mxu2 %v1126_v55 }
  0x87   :  { %v108_v54 = vpop.f32.mrf.mxu1 }
  0x8d   :  { %988 = vmatmul.msk.bf16.vlgmr.msra.gmra.mxu2 %vm72_vm4, %v489_v26  ;;  %v1129_v26 = vld [vmem:[%s1469_s3 + $0x48] sm:$0xff] }
  0x8e   :  { %v89_v56 = vpop.f32.mrf.mxu0 }
  0x8f   :  { %v109_v58 = vadd.f32 %v108_v54, %v89_v56  ;;  %v110_v12 = vpop.f32.mrf.mxu1  ;;  %v1135_v54 = vld [vmem:[%s1469_s3 + $0x78] sm:$0xff] }
  0x90   :  { %v136_v60 = vpop.f32.mrf.mxu2 }
  0x91   :  { %v141_v63 = vadd.f32 %v136_v60, %v109_v58  ;;  %v1134_v58 = vld [vmem:[%s1469_s3 + $0x70] sm:$0xff]  ;;  %v1125_v60 = vld [vmem:[%s1469_s3 + $0x28] sm:$0xff] }
  0x92   :  { %804 = vmatpush.bf16.msrb.mxu2 %v1125_v60 }
  0x93   :  { %v146_v7 = vadd.f32 %v1321_v0, %v141_v63  ;;  %v1124_v63 = vld [vmem:[%s1469_s3 + $0x20] sm:$0xff] }
  0x95   :  { %v148_v22 = vmax.f32 %v146_v7, 0.0 }
  0x96   :  { %v91_v13 = vpop.f32.mrf.mxu0  ;;  %805 = vmatpush.bf16.msrb.mxu2 %v1124_v63 }
  0x97   :  { %v111_v18 = vadd.f32 %v110_v12, %v91_v13  ;;  %v150_v27 = vpack.c.bf16 %v148_v22, %v148_v22  ;;  %v1399_v13 = vld [vmem:[%s1471_s6] ss:$0 sm:$0xff] }
  0x98   :  { %v138_v19 = vpop.f32.mrf.mxu2 }
  0x99   :  { %v142_v23 = vadd.f32 %v138_v19, %v111_v18  ;;  %v154_v30 = vunpack.c.l.b16 %v150_v27  ;;  %v1130_v18 = vld [vmem:[%s1469_s3 + $0x50] sm:$0xff]  ;;  %v837_v19 = vld [vmem:[%s1470_s4] sm:$0x3]  ;;  %v833_v27 = vpop.permute.xlu0 %832 }
  0x9a   :  { %806 = vmatpush.bf16.msrb.mxu2 %v1123_v6  ;;  %v842_v24 = vsel %vm76_vm0, %v837_v19, 0 }
  0x9b   :  { %v147_v25 = vadd.f32 %v1321_v0, %v142_v23 }
  0x9d   :  { %v149_v28 = vmax.f32 %v147_v25, 0.0  ;;  %v1138_v25 = vld [vmem:[%s1469_s3 + $0x90] sm:$0xff] }
  0x9e   :  { %807 = vmatpush.bf16.msrb.mxu2 %v1122_v14  ;;  %694 = vmatpush.bf16.msra.mxu1 %v1138_v25 }
  0x9f   :  { %v151_v29 = vpack.c.bf16 %v149_v28, %v149_v28  ;;  %v1120_v28 = vld [vmem:[%s1469_s3] sm:$0xff] }
  0xa1   :  { %v155_v31 = vunpack.c.l.b16 %v151_v29  ;;  %v835_v29 = vmax.f32 %v830_v33, %v833_v27 }
  0xa2   :  { %808 = vmatpush.bf16.msrb.mxu2 %v1121_v21 }
  0xa3   :  { %v156_v32 = vpack.c.b16 %v155_v31, %v154_v30  ;;  %v1137_v31 = vld [vmem:[%s1469_s3 + $0x88] sm:$0xff] }
  0xa4   :  { %695 = vmatpush.bf16.msra.mxu1 %v1137_v31 }
  0xa5   :  { %v158_v34 = vshrl.u32 %v156_v32, 16  ;;  %v161_v36 = vshll.u32 %v156_v32, 16  ;;  %v1128_v32 = vld [vmem:[%s1469_s3 + $0x40] sm:$0xff] }
  0xa6   :  { %809 = vmatpush.bf16.msrb.mxu2 %v1120_v28 }
  0xa7   :  { %v160_v35 = vrot.slane %v158_v34, 7  ;;  %v836_v34 = vpack.c.bf16 %v835_v29, %v835_v29 }
  0xa9   :  { %v163_v37 = vor.u32 %v161_v36, %v160_v35  ;;  %v167_v39 = vsel %vm1219_vm3, %v160_v35, 0 }
  0xab   :  { %v166_v38 = vsel %vm1219_vm3, 0, %v163_v37  ;;  %v1136_v37 = vld [vmem:[%s1469_s3 + $0x80] sm:$0xff] }
  0xac   :  { %v915_v40 = vpack.c.b16 %v166_v38, %v166_v38  ;;  %v170_v41 = vunpack.i.h.s16 %v166_v38  ;;  %v882_v42 = vpack.c.b16 %v167_v39, %v166_v38  ;;  %696 = vmatpush.bf16.msra.mxu1 %v1136_v37 }
  0xae   :  { %399 = vmatmul.bf16.vlgmr.msrb.gmra.mxu0 %v915_v40  ;;  %v292_v43 = vpack.c.b16 %v170_v41, %v170_v41  ;;  %v225_v44 = vshll.u32 %v882_v42, 16  ;;  %v223_v45 = vshrl.u32 %v882_v42, 16 }
  0xaf   :  { %851 = vmatpush.bf16.msrb.mxu0 %v842_v24 }
  0xb0   :  { %412 = vmatmul.bf16.vlgmr.msrb.gmra.mxu1 %v292_v43  ;;  %v227_v46 = vrot.slane %v225_v44, 1 }
  0xb2   :  { %v228_v47 = vor.u32 %v227_v46, %v223_v45 }
  0xb4   :  { %286 = vmatmul.bf16.vlgmr.msra.gmra.mxu3 %v228_v47 }
  0xb5   :  { %815 = vmatpush.bf16.msra.mxu3 %v1135_v54 }
  0xb9   :  { %816 = vmatpush.bf16.msra.mxu3 %v1134_v58 }
  0xbd   :  { %817 = vmatpush.bf16.msra.mxu3 %v1133_v62 }
  0xbe   :  { %991 = vmatmul.msk.bf16.vlgmr.msra.gmra.mxu0 %vm72_vm4, %v534_v50 }
  0xc1   :  { %818 = vmatpush.bf16.msra.mxu3 %v1132_v3 }
  0xc4   :  { %989 = vmatmul.msk.bf16.vlgmr.msrb.gmra.mxu3 %vm72_vm4, %v474_v4 }
  0xc5   :  { %819 = vmatpush.bf16.msra.mxu3 %v1131_v11 }
  0xc9   :  { %820 = vmatpush.bf16.msra.mxu3 %v1130_v18 }
  0xcd   :  { %821 = vmatpush.bf16.msra.mxu3 %v1129_v26 }
  0xce   :  { %1091 = vmatmul.msk.bf16.vlgmr.msrb.gmra.mxu0 %vm72_vm4, %v836_v34 }
  0xd1   :  { %822 = vmatpush.bf16.msra.mxu3 %v1128_v32 }
 0x100   :  { %v441_v51 = vpop.f32.mrf.mxu2 }
 0x108   :  { %v443_v52 = vpop.f32.mrf.mxu2 }
 0x110   :  { %v505_v35 = vpop.f32.mrf.mxu2 }
 0x118   :  { %v507_v40 = vpop.f32.mrf.mxu2 }
 0x12b   :  { %v400_v56 = vpop.f32.mrf.mxu0 }
 0x12d   :  { %v413_v59 = vpop.f32.mrf.mxu1 }
 0x133   :  { %v402_v1 = vpop.f32.mrf.mxu0 }
 0x135   :  { %v415_v4 = vpop.f32.mrf.mxu1 }
 0x137   :  { %v287_v7 = vpop.f32.mrf.mxu3 }
 0x138   :  { %v401_v8 = vadd.f32 %v400_v56, %v287_v7 }
 0x13a   :  { %v414_v12 = vadd.f32 %v413_v59, %v401_v8 }
 0x13b   :  { %v550_v5 = vpop.f32.mrf.mxu0 }
 0x13c   :  { %v445_v15 = vadd.f32 %v441_v51, %v414_v12 }
 0x13e   :  { %v450_v20 = vmul.f32 %v1399_v13, %v445_v15  ;;  %446 = vst [vmem:[%s1473_s9] sm:$0xff] %v445_v15 }
 0x13f   :  { %v289_v22 = vpop.f32.mrf.mxu3 }
 0x140   :  { %v454_v23 = vadd.f32 %v1407_v16, %v450_v20 }
 0x142   :  { %v455_v30 = vmax.f32 %v454_v23, 0.0 }
 0x143   :  { %v552_v43 = vpop.f32.mrf.mxu0 }
 0x144   :  { %456 = vst [vmem:[%s1474_s8] sm:$0xff] %v455_v30 }
 0x147   :  { %v524_v33 = vpop.f32.mrf.mxu3 }
 0x148   :  { %v525_v36 = vadd.f32 %v524_v33, %v505_v35 }
 0x14a   :  { %v555_v38 = vadd.f32 %v550_v5, %v525_v36 }
 0x14b   :  { %v853_v3 = vpop.f32.mrf.mxu0 }
 0x14c   :  { %v557_v39 = vadd.f32 %v1321_v0, %v555_v38 }
 0x14e   :  { %v559_v44 = vmax.f32 %v557_v39, 0.0 }
 0x14f   :  { %v526_v41 = vpop.f32.mrf.mxu3 }
 0x150   :  { %v527_v42 = vadd.f32 %v526_v41, %v507_v40  ;;  %v561_v47 = vpack.c.bf16 %v559_v44, %v559_v44 }
 0x152   :  { %v556_v45 = vadd.f32 %v552_v43, %v527_v42  ;;  %v565_v50 = vunpack.c.l.b16 %v561_v47 }
 0x153   :  { %v855_v4 = vpop.f32.mrf.mxu0 }
 0x154   :  { %v558_v46 = vadd.f32 %v1321_v0, %v556_v45 }
 0x156   :  { %v560_v48 = vmax.f32 %v558_v46, 0.0 }
 0x158   :  { %v562_v49 = vpack.c.bf16 %v560_v48, %v560_v48 }
 0x15a   :  { %v566_v51 = vunpack.c.l.b16 %v562_v49 }
 0x15c   :  { %v567_v52 = vpack.c.b16 %v566_v51, %v565_v50 }
 0x15e   :  { %v569_v53 = vshrl.u32 %v567_v52, 16  ;;  %v572_v55 = vshll.u32 %v567_v52, 16 }
 0x160   :  { %v571_v54 = vrot.slane %v569_v53, 7 }
 0x162   :  { %v574_v56 = vor.u32 %v572_v55, %v571_v54  ;;  %v578_v58 = vsel %vm1219_vm3, %v571_v54, 0 }
 0x164   :  { %v577_v57 = vsel %vm1219_vm3, 0, %v574_v56 }
 0x165   :  { %v1025_v59 = vpack.c.b16 %v577_v57, %v577_v57  ;;  %v581_v60 = vunpack.i.h.s16 %v577_v57  ;;  %v992_v61 = vpack.c.b16 %v578_v58, %v577_v57 }
 0x167   :  { %810 = vmatmul.bf16.vlgmr.msrb.gmra.mxu2 %v1025_v59  ;;  %v703_v0 = vpack.c.b16 %v581_v60, %v581_v60  ;;  %v636_v62 = vshll.u32 %v992_v61, 16  ;;  %v634_v63 = vshrl.u32 %v992_v61, 16 }
 0x169   :  { %823 = vmatmul.bf16.vlgmr.msra.gmra.mxu3 %v703_v0  ;;  %v638_v1 = vrot.slane %v636_v62, 1 }
 0x16b   :  { %v639_v2 = vor.u32 %v638_v1, %v634_v63 }
 0x16d   :  { %697 = vmatmul.bf16.vlgmr.msra.gmra.mxu1 %v639_v2 }
 0x1ea   :  { %v698_v6 = vpop.f32.mrf.mxu1  ;;  %v811_v7 = vpop.f32.mrf.mxu2 }
 0x1eb   :  { %v812_v8 = vadd.f32 %v811_v7, %v698_v6 }
 0x1ec   :  { %v824_v9 = vpop.f32.mrf.mxu3 }
 0x1ed   :  { %v825_v11 = vadd.f32 %v824_v9, %v812_v8 }
 0x1ef   :  { %v857_v10 = vadd.f32 %v853_v3, %v825_v11 }
 0x1f1   :  { %1092 = vst [vmem:[%s1473_s9 + $0x8] sm:$0xff] %v857_v10  ;;  %v860_v12 = vmul.f32 %v1399_v13, %v857_v10 }
 0x1f2   :  { %v700_v14 = vpop.f32.mrf.mxu1  ;;  %v813_v15 = vpop.f32.mrf.mxu2 }
 0x1f3   :  { %v861_v17 = vadd.f32 %v1407_v16, %v860_v12 }
 0x1f4   :  { %v826_v18 = vpop.f32.mrf.mxu3 }
 0x1f5   :  { %v862_v19 = vmax.f32 %v861_v17, 0.0 }
 0x1f7   :  { %1093 = vst [vmem:[%s1474_s8 + $0x8] sm:$0xff] %v862_v19 }

</bundles_post_ra>
